<compile_context>
chip_gen: v7x
topology: tpu7x:2x2x1
jax: 0.10.0
libtpu: 0.0.40
codegen_flags: <defaults>
</compile_context>

<pallas_src>
import math

import jax
import jax.numpy as jnp
from jax import lax
from jax.experimental import pallas as pl
from jax.experimental.pallas import tpu as pltpu

FEATURE_DIM = 64          # divisible by num_heads = 8
NUM_HEADS = 8
HEAD_DIM = FEATURE_DIM // NUM_HEADS
PROMPT_LEN = 12
IMG_HW = 16
IMG_FLAT = 3 * IMG_HW * IMG_HW
BATCH = 2

_VMEM = pl.BlockSpec(memory_space=pltpu.MemorySpace.VMEM)

# ---- static layout of the packed bf16 weight slab (row offsets; all matrices padded to 64 cols) ----
_W_LAYOUT = (
    ("clip", IMG_FLAT),
    ("wq", FEATURE_DIM), ("wk", FEATURE_DIM), ("wv", FEATURE_DIM), ("wo", FEATURE_DIM),
    ("ft1", 3 * FEATURE_DIM), ("ft2", FEATURE_DIM), ("gate", FEATURE_DIM),
    ("s1", FEATURE_DIM), ("s2", FEATURE_DIM // 2), ("s3", FEATURE_DIM // 4),
    ("hw1", FEATURE_DIM), ("hw2", FEATURE_DIM),
    ("ind", FEATURE_DIM), ("indt", FEATURE_DIM),
)
W_OFF, W_ROWS = {}, {}
_o = 0
for _n, _r in _W_LAYOUT:
    W_OFF[_n], W_ROWS[_n] = _o, _r
    _o += _r
W_TOTAL_ROWS = _o

# ---- static layout of the packed f32 bias/scale slab (one row per vector, padded to 64) ----
(B_CLIP, B_Q, B_K, B_V, B_O, B_FT1, B_LNG, B_LNB, B_FT2, B_GATE,
 B_S1, B_LN1G, B_LN1B, B_S2, B_LN2G, B_LN2B, B_S3, B_HB1, B_HB2) = range(19)
B_TOTAL_ROWS = 24

_SQRT2_INV = 1.0 / math.sqrt(2.0)


# ------------------------------ in-kernel helpers --------------------------- #

def _erf(x):
    # Abramowitz & Stegun 7.1.26 (|err| < 1.5e-7): exact-erf GELU without a lax.erf lowering.
    a1, a2, a3, a4, a5 = 0.254829592, -0.284496736, 1.421413741, -1.453152027, 1.061405429
    p = 0.3275911
    ax = jnp.abs(x)
    t = 1.0 / (1.0 + p * ax)
    poly = ((((a5 * t + a4) * t + a3) * t + a2) * t + a1) * t
    y = 1.0 - poly * jnp.exp(-ax * ax)
    return jnp.where(x >= 0.0, y, -y)


def _gelu(x):  # matches torch.nn.GELU (erf form)
    return 0.5 * x * (1.0 + _erf(x * _SQRT2_INV))


def _sigmoid(x):
    return 1.0 / (1.0 + jnp.exp(-x))


def _layernorm(x, g, b):
    mean = jnp.mean(x, axis=-1, keepdims=True)
    var = jnp.mean(jnp.square(x - mean), axis=-1, keepdims=True)
    return (x - mean) * lax.rsqrt(var + 1e-5) * g + b


def _l2norm(x, eps=1e-12):
    # x / max(||x||, eps)  (F.normalize semantics; eps only guards zero vectors)
    sq = jnp.sum(x * x, axis=-1, keepdims=True)
    return x * lax.rsqrt(jnp.maximum(sq, eps * eps))


# ------------------------------- fused kernel ------------------------------- #

def _fused_forward_kernel(img_ref, pos_ref, neg_ref, w_ref, b_ref, out_ref):
    B = img_ref.shape[0]
    D = FEATURE_DIM
    H = NUM_HEADS
    scale = 1.0 / math.sqrt(HEAD_DIM)

    def wmat(name):                               # bf16 weight block from the slab
        off = W_OFF[name]
        return w_ref[off:off + W_ROWS[name], :]

    def brow(i):                                  # f32 [1, 64] bias/scale row
        return b_ref[i:i + 1, :]

    def mxu(x, w):                                # f32 activation x bf16 weight -> f32
        return jnp.dot(x.astype(jnp.bfloat16), w, preferred_element_type=jnp.float32)

    # ---- CLIP stub image encoder + L2 normalize ----
    img_feat = _l2norm(mxu(img_ref[...], wmat("clip")) + brow(B_CLIP))            # [B, D]

    # ---- prompt encoding: mean over prompt length + L2 normalize ----
    pos_feat = _l2norm(jnp.mean(pos_ref[...], axis=1))                            # [B, D]
    neg_feat = _l2norm(jnp.mean(neg_ref[...], axis=1))                            # [B, D]

    # ---- multi-head cross attention over the 3-token sequence (position-major rows) ----
    seq = jnp.concatenate([img_feat, pos_feat, neg_feat], axis=0)                 # [3B, D]
    seq_b = seq.astype(jnp.bfloat16)
    q = (jnp.dot(seq_b, wmat("wq"), preferred_element_type=jnp.float32) + brow(B_Q)) * scale
    k = jnp.dot(seq_b, wmat("wk"), preferred_element_type=jnp.float32) + brow(B_K)
    v = jnp.dot(seq_b, wmat("wv"), preferred_element_type=jnp.float32) + brow(B_V)

    ind = wmat("ind")     # [D, D]: col h<8 is the head-h indicator over feature dims, rest 0
    indt = wmat("indt")   # [D, D]: its transpose (rows >= 8 are zero)

    def pos_tile(x, j):   # replicate key/value position block j across the 3 query positions
        blk = x[j * B:(j + 1) * B, :]
        return jnp.concatenate([blk, blk, blk], axis=0)                           # [3B, D]

    k_t = [pos_tile(k, j) for j in range(3)]
    v_t = [pos_tile(v, j) for j in range(3)]
    s = [mxu(q * k_t[j], ind) for j in range(3)]          # per-head scores; cols >= H are 0
    m = jnp.maximum(jnp.maximum(s[0], s[1]), s[2])
    e = [jnp.exp(sj - m) for sj in s]
    inv = pl.reciprocal(e[0] + e[1] + e[2], approx=True)
    att = (mxu(e[0] * inv, indt) * v_t[0]
           + mxu(e[1] * inv, indt) * v_t[1]
           + mxu(e[2] * inv, indt) * v_t[2])                                      # [3B, D]
    attended = mxu(att, wmat("wo")) + brow(B_O)                                   # [3B, D]

    # ---- feature_transform on concatenated [att@img | att@pos | att@neg] ----
    fo = W_OFF["ft1"]
    t = (jnp.dot(attended[0:B].astype(jnp.bfloat16), w_ref[fo:fo + D, :],
                 preferred_element_type=jnp.float32)
         + jnp.dot(attended[B:2 * B].astype(jnp.bfloat16), w_ref[fo + D:fo + 2 * D, :],
                   preferred_element_type=jnp.float32)
         + jnp.dot(attended[2 * B:3 * B].astype(jnp.bfloat16), w_ref[fo + 2 * D:fo + 3 * D, :],
                   preferred_element_type=jnp.float32)
         + brow(B_FT1))
    t = _gelu(_layernorm(t, brow(B_LNG), brow(B_LNB)))      # Dropout = identity (eval)
    t = mxu(t, wmat("ft2")) + brow(B_FT2)
    gate = _sigmoid(mxu(img_feat, wmat("gate")) + brow(B_GATE))
    fused = gate * t + (1.0 - gate) * img_feat                                    # [B, D]

    # ---- anomaly scorer: main branch ----
    h1 = mxu(fused, wmat("s1")) + brow(B_S1)                                      # cols >= D/2 are 0
    h1 = jnp.maximum(_layernorm(h1[:, :D // 2], brow(B_LN1G)[:, :D // 2],
                                brow(B_LN1B)[:, :D // 2]), 0.0)                   # [B, D/2]
    h2 = mxu(h1, wmat("s2")) + brow(B_S2)                                         # cols >= D/4 are 0
    h2 = jnp.maximum(_layernorm(h2[:, :D // 4], brow(B_LN2G)[:, :D // 4],
                                brow(B_LN2B)[:, :D // 4]), 0.0)                   # [B, D/4]
    main = _sigmoid(mxu(h2, wmat("s3"))[:, 0:1] + brow(B_S3)[:, 0:1])             # [B, 1]

    # ---- 3 ensemble heads (input = fused) + threshold predictor (input = img_feat) ----
    hin = jnp.concatenate([fused, img_feat], axis=0)                              # [2B, D]
    hh = jnp.maximum(mxu(hin, wmat("hw1")) + brow(B_HB1), 0.0)                    # [2B, D]
    o4 = _sigmoid(mxu(hh, wmat("hw2")) + brow(B_HB2))                             # [2B, D]; cols 0..3 used
    ens_mean = jnp.sum(o4[0:B, 0:3], axis=-1, keepdims=True) * (1.0 / 3.0)        # [B, 1]
    thr = o4[B:2 * B, 3:4]                                                        # [B, 1]

    score = 0.7 * main + 0.3 * ens_mean
    # AdaptiveThresholdModule eval buffers: running_mean=0, running_var=1, eps=1e-8
    normalized = score * (1.0 / math.sqrt(1.0 + 1e-8))
    adjusted = _sigmoid(normalized + thr)                                         # [B, 1]

    # ---- lane-dense packed output: three 128-aligned stores ----
    out_ref[:, 0:2 * D] = jnp.concatenate([pos_feat, neg_feat], axis=-1)
    out_ref[:, 2 * D:4 * D] = jnp.concatenate([fused, img_feat], axis=-1)
    out_ref[:, 4 * D:6 * D] = jnp.broadcast_to(adjusted, (B, 2 * D))


# --------------------------- parameter construction ------------------------ #

def init_params(key):
    keys = iter(jax.random.split(key, 64))
    D = FEATURE_DIM

    def W(din, dout):
        return 0.02 * jax.random.normal(next(keys), (din, dout), jnp.float32)

    def Bz(dout):
        return jnp.zeros((dout,), jnp.float32)

    p = {}
    # CLIP stub encoder
    p["clip_w"], p["clip_b"] = W(IMG_FLAT, D), Bz(D)
    # FeatureFusionNetwork: MultiheadAttention (q/k/v/out projections)
    for name in ("q", "k", "v", "o"):
        p[f"w{name}"], p[f"b{name}"] = W(D, D), Bz(D)
    # feature_transform: Linear(3D->D), LayerNorm(D), GELU, Dropout, Linear(D->D)
    p["ft1_w"], p["ft1_b"] = W(3 * D, D), Bz(D)
    p["ln_g"], p["ln_b"] = jnp.ones((D,), jnp.float32), jnp.zeros((D,), jnp.float32)
    p["ft2_w"], p["ft2_b"] = W(D, D), Bz(D)
    p["gate_w"], p["gate_b"] = W(D, D), Bz(D)
    # AnomalyScoreCalculator main network
    p["s1_w"], p["s1_b"] = W(D, D // 2), Bz(D // 2)
    p["ln1_g"], p["ln1_b"] = jnp.ones((D // 2,), jnp.float32), jnp.zeros((D // 2,), jnp.float32)
    p["s2_w"], p["s2_b"] = W(D // 2, D // 4), Bz(D // 4)
    p["ln2_g"], p["ln2_b"] = jnp.ones((D // 4,), jnp.float32), jnp.zeros((D // 4,), jnp.float32)
    p["s3_w"], p["s3_b"] = W(D // 4, 1), Bz(1)
    # 3 ensemble heads
    for i in range(3):
        p[f"e{i}_w1"], p[f"e{i}_b1"] = W(D, D // 4), Bz(D // 4)
        p[f"e{i}_w2"], p[f"e{i}_b2"] = W(D // 4, 1), Bz(1)
    # AdaptiveThresholdModule threshold predictor
    p["t1_w"], p["t1_b"] = W(D, D // 4), Bz(D // 4)
    p["t2_w"], p["t2_b"] = W(D // 4, 1), Bz(1)
    return p


def pack_params(p):
    """One-time packing of all weights into a bf16 slab + f32 bias/scale slab."""
    D = FEATURE_DIM
    f32 = jnp.float32

    def pad_cols(w):
        r, c = w.shape
        if c == D:
            return w
        return jnp.concatenate([w, jnp.zeros((r, D - c), w.dtype)], axis=1)

    # ensemble + threshold first layers column-concatenated; block-diagonal second layer
    hw1 = jnp.concatenate([p["e0_w1"], p["e1_w1"], p["e2_w1"], p["t1_w"]], axis=1)      # [D, D]
    z = jnp.zeros((D // 4, 1), f32)
    hw2 = jnp.concatenate([
        jnp.concatenate([p["e0_w2"], z, z, z], axis=0),
        jnp.concatenate([z, p["e1_w2"], z, z], axis=0),
        jnp.concatenate([z, z, p["e2_w2"], z], axis=0),
        jnp.concatenate([z, z, z, p["t2_w"]], axis=0),
    ], axis=1)                                                                           # [D, 4]

    # per-head indicator matrix: ind[d, h] = 1 iff d // HEAD_DIM == h  (cols >= H are zero)
    d_idx = jnp.arange(D)
    ind = ((d_idx[:, None] // HEAD_DIM) == d_idx[None, :]).astype(f32)                   # [D, D]

    mats = {
        "clip": p["clip_w"],
        "wq": p["wq"], "wk": p["wk"], "wv": p["wv"], "wo": p["wo"],
        "ft1": p["ft1_w"], "ft2": p["ft2_w"], "gate": p["gate_w"],
        "s1": p["s1_w"], "s2": p["s2_w"], "s3": p["s3_w"],
        "hw1": hw1, "hw2": hw2,
        "ind": ind, "indt": ind.T,
    }
    blocks = []
    for name, rows in _W_LAYOUT:
        blk = pad_cols(mats[name])
        assert blk.shape == (rows, D), (name, blk.shape)
        blocks.append(blk.astype(jnp.bfloat16))
    w_slab = jnp.concatenate(blocks, axis=0)                                             # [W_TOTAL_ROWS, D]

    def pad_row(v):
        v = v.reshape(-1)
        return jnp.pad(v, (0, D - v.shape[0])).reshape(1, D).astype(f32)

    hb1 = jnp.concatenate([p["e0_b1"], p["e1_b1"], p["e2_b1"], p["t1_b"]])
    hb2 = jnp.concatenate([p["e0_b2"], p["e1_b2"], p["e2_b2"], p["t2_b"]])
    rows = [
        p["clip_b"], p["bq"], p["bk"], p["bv"], p["bo"],
        p["ft1_b"], p["ln_g"], p["ln_b"], p["ft2_b"], p["gate_b"],
        p["s1_b"], p["ln1_g"], p["ln1_b"], p["s2_b"], p["ln2_g"], p["ln2_b"], p["s3_b"],
        hb1, hb2,
    ]
    b_slab = jnp.concatenate([pad_row(r) for r in rows], axis=0)
    b_slab = jnp.concatenate(
        [b_slab, jnp.zeros((B_TOTAL_ROWS - b_slab.shape[0], D), f32)], axis=0)           # [24, D]

    return {"w": w_slab, "b": b_slab}


# ------------------------------ model forward ------------------------------ #

def lightweight_anomaly_detector_forward(packed, image, pos_prompt, neg_prompt):
    b = image.shape[0]
    d = FEATURE_DIM
    img_flat = image.reshape(b, -1)

    out = pl.pallas_call(
        _fused_forward_kernel,
        out_shape=jax.ShapeDtypeStruct((b, 6 * d), jnp.float32),
        in_specs=[_VMEM] * 5,
        out_specs=_VMEM,
        cost_estimate=pl.CostEstimate(
            flops=1_000_000, transcendentals=3_000, bytes_accessed=256_000),
    )(img_flat, pos_prompt, neg_prompt, packed["w"], packed["b"])

    pos_feat = out[:, 0:d]
    neg_feat = out[:, d:2 * d]
    fused = out[:, 2 * d:3 * d]
    img_feat = out[:, 3 * d:4 * d]
    adjusted = out[:, 4 * d]                                                              # [B]

    features = {"pos": pos_feat, "neg": neg_feat, "fused": fused, "image": img_feat}
    return adjusted, features


# ----------------------------------- main ----------------------------------- #

if __name__ == "__main__":
    key = jax.random.PRNGKey(0)
    kp, ki, kpos, kneg = jax.random.split(key, 4)
    packed = pack_params(init_params(kp))    # weight packing happens exactly once, at init

    image = jax.random.normal(ki, (BATCH, 3, IMG_HW, IMG_HW), jnp.float32)
    pos_prompt = jax.random.normal(kpos, (BATCH, PROMPT_LEN, FEATURE_DIM), jnp.float32)
    neg_prompt = jax.random.normal(kneg, (BATCH, PROMPT_LEN, FEATURE_DIM), jnp.float32)

    fwd = jax.jit(lightweight_anomaly_detector_forward)
    adjusted_score, feats = fwd(packed, image, pos_prompt, neg_prompt)
    jax.block_until_ready(adjusted_score)

    assert adjusted_score.shape == (BATCH,)
    assert feats["pos"].shape == (BATCH, FEATURE_DIM)
    assert feats["neg"].shape == (BATCH, FEATURE_DIM)
    assert feats["fused"].shape == (BATCH, FEATURE_DIM)
    assert feats["image"].shape == (BATCH, FEATURE_DIM)
    assert bool(jnp.all(jnp.isfinite(adjusted_score)))
    assert bool(jnp.all((adjusted_score >= 0.0) & (adjusted_score <= 1.0)))
    print("KERNEL_OK")
</pallas_src>

<mosaic_0001>
module attributes {stable_mosaic.version = 11 : i64} {
  func.func @_fused_forward_kernel(%arg0: memref<2x768xf32, #tpu.memory_space<vmem>>, %arg1: memref<2x12x64xf32, #tpu.memory_space<vmem>>, %arg2: memref<2x12x64xf32, #tpu.memory_space<vmem>>, %arg3: memref<1712x64xbf16, #tpu.memory_space<vmem>>, %arg4: memref<24x64xf32, #tpu.memory_space<vmem>>, %arg5: memref<2x384xf32, #tpu.memory_space<vmem>>) attributes {dimension_semantics = [], scalar_prefetch = 0 : i64, scratch_operands = 0 : i64, tpu.core_type = #tpu.core_type<tc>} {
    %c0 = arith.constant 0 : index
    %c0_0 = arith.constant 0 : index
    %0 = vector.load %arg0[%c0, %c0_0] : memref<2x768xf32, #tpu.memory_space<vmem>>, vector<2x768xf32>
    %c0_1 = arith.constant 0 : index
    %c0_2 = arith.constant 0 : index
    %1 = vector.load %arg3[%c0_1, %c0_2] : memref<1712x64xbf16, #tpu.memory_space<vmem>>, vector<768x64xbf16>
    %2 = arith.truncf %0 : vector<2x768xf32> to vector<2x768xbf16>
    %cst = arith.constant dense<0.000000e+00> : vector<2x64xf32>
    %3 = tpu.matmul %2, %1, %cst {dimension_numbers = #tpu.dot_dimension_numbers<[1], [0], [0], [1], [0, 0, 1, 1], [], []>} : vector<2x768xbf16>, vector<768x64xbf16>, vector<2x64xf32> -> vector<2x64xf32>
    %c0_3 = arith.constant 0 : index
    %c0_4 = arith.constant 0 : index
    %4 = vector.load %arg4[%c0_3, %c0_4] : memref<24x64xf32, #tpu.memory_space<vmem>>, vector<1x64xf32>
    %5 = vector.broadcast %4 : vector<1x64xf32> to vector<2x64xf32>
    %6 = arith.addf %3, %5 : vector<2x64xf32>
    %7 = arith.mulf %6, %6 : vector<2x64xf32>
    %cst_5 = arith.constant dense<0.000000e+00> : vector<2xf32>
    %8 = vector.multi_reduction <add>, %7, %cst_5 [1] : vector<2x64xf32> to vector<2xf32>
    %9 = vector.shape_cast %8 : vector<2xf32> to vector<2x1xf32>
    %cst_6 = arith.constant 1.000000e-24 : f32
    %10 = vector.broadcast %cst_6 : f32 to vector<2x1xf32>
    %11 = arith.maximumf %9, %10 : vector<2x1xf32>
    %12 = math.rsqrt %11 : vector<2x1xf32>
    %13 = vector.broadcast %12 : vector<2x1xf32> to vector<2x64xf32>
    %14 = arith.mulf %6, %13 : vector<2x64xf32>
    %c0_7 = arith.constant 0 : index
    %c0_8 = arith.constant 0 : index
    %c0_9 = arith.constant 0 : index
    %15 = vector.load %arg1[%c0_7, %c0_8, %c0_9] : memref<2x12x64xf32, #tpu.memory_space<vmem>>, vector<2x12x64xf32>
    %cst_10 = arith.constant dense<0.000000e+00> : vector<2x64xf32>
    %16 = vector.multi_reduction <add>, %15, %cst_10 [1] : vector<2x12x64xf32> to vector<2x64xf32>
    %cst_11 = arith.constant 1.200000e+01 : f32
    %17 = vector.broadcast %cst_11 : f32 to vector<2x64xf32>
    %18 = arith.divf %16, %17 : vector<2x64xf32>
    %19 = arith.mulf %18, %18 : vector<2x64xf32>
    %cst_12 = arith.constant dense<0.000000e+00> : vector<2xf32>
    %20 = vector.multi_reduction <add>, %19, %cst_12 [1] : vector<2x64xf32> to vector<2xf32>
    %21 = vector.shape_cast %20 : vector<2xf32> to vector<2x1xf32>
    %cst_13 = arith.constant 1.000000e-24 : f32
    %22 = vector.broadcast %cst_13 : f32 to vector<2x1xf32>
    %23 = arith.maximumf %21, %22 : vector<2x1xf32>
    %24 = math.rsqrt %23 : vector<2x1xf32>
    %25 = vector.broadcast %24 : vector<2x1xf32> to vector<2x64xf32>
    %26 = arith.mulf %18, %25 : vector<2x64xf32>
    %c0_14 = arith.constant 0 : index
    %c0_15 = arith.constant 0 : index
    %c0_16 = arith.constant 0 : index
    %27 = vector.load %arg2[%c0_14, %c0_15, %c0_16] : memref<2x12x64xf32, #tpu.memory_space<vmem>>, vector<2x12x64xf32>
    %cst_17 = arith.constant dense<0.000000e+00> : vector<2x64xf32>
    %28 = vector.multi_reduction <add>, %27, %cst_17 [1] : vector<2x12x64xf32> to vector<2x64xf32>
    %cst_18 = arith.constant 1.200000e+01 : f32
    %29 = vector.broadcast %cst_18 : f32 to vector<2x64xf32>
    %30 = arith.divf %28, %29 : vector<2x64xf32>
    %31 = arith.mulf %30, %30 : vector<2x64xf32>
    %cst_19 = arith.constant dense<0.000000e+00> : vector<2xf32>
    %32 = vector.multi_reduction <add>, %31, %cst_19 [1] : vector<2x64xf32> to vector<2xf32>
    %33 = vector.shape_cast %32 : vector<2xf32> to vector<2x1xf32>
    %cst_20 = arith.constant 1.000000e-24 : f32
    %34 = vector.broadcast %cst_20 : f32 to vector<2x1xf32>
    %35 = arith.maximumf %33, %34 : vector<2x1xf32>
    %36 = math.rsqrt %35 : vector<2x1xf32>
    %37 = vector.broadcast %36 : vector<2x1xf32> to vector<2x64xf32>
    %38 = arith.mulf %30, %37 : vector<2x64xf32>
    %39 = tpu.concatenate %14, %26, %38 in 0 : vector<2x64xf32>, vector<2x64xf32>, vector<2x64xf32> -> vector<6x64xf32>
    %40 = arith.truncf %39 : vector<6x64xf32> to vector<6x64xbf16>
    %c768 = arith.constant 768 : index
    %c0_21 = arith.constant 0 : index
    %41 = vector.load %arg3[%c768, %c0_21] : memref<1712x64xbf16, #tpu.memory_space<vmem>>, vector<64x64xbf16>
    %cst_22 = arith.constant dense<0.000000e+00> : vector<6x64xf32>
    %42 = tpu.matmul %40, %41, %cst_22 {dimension_numbers = #tpu.dot_dimension_numbers<[1], [0], [0], [1], [0, 0, 1, 1], [], []>} : vector<6x64xbf16>, vector<64x64xbf16>, vector<6x64xf32> -> vector<6x64xf32>
    %c1 = arith.constant 1 : index
    %c0_23 = arith.constant 0 : index
    %43 = vector.load %arg4[%c1, %c0_23] : memref<24x64xf32, #tpu.memory_space<vmem>>, vector<1x64xf32>
    %44 = vector.broadcast %43 : vector<1x64xf32> to vector<6x64xf32>
    %45 = arith.addf %42, %44 : vector<6x64xf32>
    %cst_24 = arith.constant 0.353553385 : f32
    %46 = vector.broadcast %cst_24 : f32 to vector<6x64xf32>
    %47 = arith.mulf %45, %46 : vector<6x64xf32>
    %c832 = arith.constant 832 : index
    %c0_25 = arith.constant 0 : index
    %48 = vector.load %arg3[%c832, %c0_25] : memref<1712x64xbf16, #tpu.memory_space<vmem>>, vector<64x64xbf16>
    %cst_26 = arith.constant dense<0.000000e+00> : vector<6x64xf32>
    %49 = tpu.matmul %40, %48, %cst_26 {dimension_numbers = #tpu.dot_dimension_numbers<[1], [0], [0], [1], [0, 0, 1, 1], [], []>} : vector<6x64xbf16>, vector<64x64xbf16>, vector<6x64xf32> -> vector<6x64xf32>
    %c2 = arith.constant 2 : index
    %c0_27 = arith.constant 0 : index
    %50 = vector.load %arg4[%c2, %c0_27] : memref<24x64xf32, #tpu.memory_space<vmem>>, vector<1x64xf32>
    %51 = vector.broadcast %50 : vector<1x64xf32> to vector<6x64xf32>
    %52 = arith.addf %49, %51 : vector<6x64xf32>
    %c896 = arith.constant 896 : index
    %c0_28 = arith.constant 0 : index
    %53 = vector.load %arg3[%c896, %c0_28] : memref<1712x64xbf16, #tpu.memory_space<vmem>>, vector<64x64xbf16>
    %cst_29 = arith.constant dense<0.000000e+00> : vector<6x64xf32>
    %54 = tpu.matmul %40, %53, %cst_29 {dimension_numbers = #tpu.dot_dimension_numbers<[1], [0], [0], [1], [0, 0, 1, 1], [], []>} : vector<6x64xbf16>, vector<64x64xbf16>, vector<6x64xf32> -> vector<6x64xf32>
    %c3 = arith.constant 3 : index
    %c0_30 = arith.constant 0 : index
    %55 = vector.load %arg4[%c3, %c0_30] : memref<24x64xf32, #tpu.memory_space<vmem>>, vector<1x64xf32>
    %56 = vector.broadcast %55 : vector<1x64xf32> to vector<6x64xf32>
    %57 = arith.addf %54, %56 : vector<6x64xf32>
    %c1584 = arith.constant 1584 : index
    %c0_31 = arith.constant 0 : index
    %58 = vector.load %arg3[%c1584, %c0_31] : memref<1712x64xbf16, #tpu.memory_space<vmem>>, vector<64x64xbf16>
    %c1648 = arith.constant 1648 : index
    %c0_32 = arith.constant 0 : index
    %59 = vector.load %arg3[%c1648, %c0_32] : memref<1712x64xbf16, #tpu.memory_space<vmem>>, vector<64x64xbf16>
    %60 = vector.extract_strided_slice %52 {offsets = [0, 0], sizes = [2, 64], strides = [1, 1]} : vector<6x64xf32> to vector<2x64xf32>
    %61 = tpu.concatenate %60, %60, %60 in 0 : vector<2x64xf32>, vector<2x64xf32>, vector<2x64xf32> -> vector<6x64xf32>
    %62 = vector.extract_strided_slice %52 {offsets = [2, 0], sizes = [2, 64], strides = [1, 1]} : vector<6x64xf32> to vector<2x64xf32>
    %63 = tpu.concatenate %62, %62, %62 in 0 : vector<2x64xf32>, vector<2x64xf32>, vector<2x64xf32> -> vector<6x64xf32>
    %64 = vector.extract_strided_slice %52 {offsets = [4, 0], sizes = [2, 64], strides = [1, 1]} : vector<6x64xf32> to vector<2x64xf32>
    %65 = tpu.concatenate %64, %64, %64 in 0 : vector<2x64xf32>, vector<2x64xf32>, vector<2x64xf32> -> vector<6x64xf32>
    %66 = vector.extract_strided_slice %57 {offsets = [0, 0], sizes = [2, 64], strides = [1, 1]} : vector<6x64xf32> to vector<2x64xf32>
    %67 = tpu.concatenate %66, %66, %66 in 0 : vector<2x64xf32>, vector<2x64xf32>, vector<2x64xf32> -> vector<6x64xf32>
    %68 = vector.extract_strided_slice %57 {offsets = [2, 0], sizes = [2, 64], strides = [1, 1]} : vector<6x64xf32> to vector<2x64xf32>
    %69 = tpu.concatenate %68, %68, %68 in 0 : vector<2x64xf32>, vector<2x64xf32>, vector<2x64xf32> -> vector<6x64xf32>
    %70 = vector.extract_strided_slice %57 {offsets = [4, 0], sizes = [2, 64], strides = [1, 1]} : vector<6x64xf32> to vector<2x64xf32>
    %71 = tpu.concatenate %70, %70, %70 in 0 : vector<2x64xf32>, vector<2x64xf32>, vector<2x64xf32> -> vector<6x64xf32>
    %72 = arith.mulf %47, %61 : vector<6x64xf32>
    %73 = arith.truncf %72 : vector<6x64xf32> to vector<6x64xbf16>
    %cst_33 = arith.constant dense<0.000000e+00> : vector<6x64xf32>
    %74 = tpu.matmul %73, %58, %cst_33 {dimension_numbers = #tpu.dot_dimension_numbers<[1], [0], [0], [1], [0, 0, 1, 1], [], []>} : vector<6x64xbf16>, vector<64x64xbf16>, vector<6x64xf32> -> vector<6x64xf32>
    %75 = arith.mulf %47, %63 : vector<6x64xf32>
    %76 = arith.truncf %75 : vector<6x64xf32> to vector<6x64xbf16>
    %cst_34 = arith.constant dense<0.000000e+00> : vector<6x64xf32>
    %77 = tpu.matmul %76, %58, %cst_34 {dimension_numbers = #tpu.dot_dimension_numbers<[1], [0], [0], [1], [0, 0, 1, 1], [], []>} : vector<6x64xbf16>, vector<64x64xbf16>, vector<6x64xf32> -> vector<6x64xf32>
    %78 = arith.mulf %47, %65 : vector<6x64xf32>
    %79 = arith.truncf %78 : vector<6x64xf32> to vector<6x64xbf16>
    %cst_35 = arith.constant dense<0.000000e+00> : vector<6x64xf32>
    %80 = tpu.matmul %79, %58, %cst_35 {dimension_numbers = #tpu.dot_dimension_numbers<[1], [0], [0], [1], [0, 0, 1, 1], [], []>} : vector<6x64xbf16>, vector<64x64xbf16>, vector<6x64xf32> -> vector<6x64xf32>
    %81 = arith.maximumf %74, %77 : vector<6x64xf32>
    %82 = arith.maximumf %81, %80 : vector<6x64xf32>
    %83 = arith.subf %74, %82 : vector<6x64xf32>
    %84 = math.exp %83 : vector<6x64xf32>
    %85 = arith.subf %77, %82 : vector<6x64xf32>
    %86 = math.exp %85 : vector<6x64xf32>
    %87 = arith.subf %80, %82 : vector<6x64xf32>
    %88 = math.exp %87 : vector<6x64xf32>
    %89 = arith.addf %84, %86 : vector<6x64xf32>
    %90 = arith.addf %89, %88 : vector<6x64xf32>
    %91 = tpu.reciprocal %90 {approx = true} : vector<6x64xf32> -> vector<6x64xf32>
    %92 = arith.mulf %84, %91 : vector<6x64xf32>
    %93 = arith.truncf %92 : vector<6x64xf32> to vector<6x64xbf16>
    %cst_36 = arith.constant dense<0.000000e+00> : vector<6x64xf32>
    %94 = tpu.matmul %93, %59, %cst_36 {dimension_numbers = #tpu.dot_dimension_numbers<[1], [0], [0], [1], [0, 0, 1, 1], [], []>} : vector<6x64xbf16>, vector<64x64xbf16>, vector<6x64xf32> -> vector<6x64xf32>
    %95 = arith.mulf %94, %67 : vector<6x64xf32>
    %96 = arith.mulf %86, %91 : vector<6x64xf32>
    %97 = arith.truncf %96 : vector<6x64xf32> to vector<6x64xbf16>
    %cst_37 = arith.constant dense<0.000000e+00> : vector<6x64xf32>
    %98 = tpu.matmul %97, %59, %cst_37 {dimension_numbers = #tpu.dot_dimension_numbers<[1], [0], [0], [1], [0, 0, 1, 1], [], []>} : vector<6x64xbf16>, vector<64x64xbf16>, vector<6x64xf32> -> vector<6x64xf32>
    %99 = arith.mulf %98, %69 : vector<6x64xf32>
    %100 = arith.addf %95, %99 : vector<6x64xf32>
    %101 = arith.mulf %88, %91 : vector<6x64xf32>
    %102 = arith.truncf %101 : vector<6x64xf32> to vector<6x64xbf16>
    %cst_38 = arith.constant dense<0.000000e+00> : vector<6x64xf32>
    %103 = tpu.matmul %102, %59, %cst_38 {dimension_numbers = #tpu.dot_dimension_numbers<[1], [0], [0], [1], [0, 0, 1, 1], [], []>} : vector<6x64xbf16>, vector<64x64xbf16>, vector<6x64xf32> -> vector<6x64xf32>
    %104 = arith.mulf %103, %71 : vector<6x64xf32>
    %105 = arith.addf %100, %104 : vector<6x64xf32>
    %c960 = arith.constant 960 : index
    %c0_39 = arith.constant 0 : index
    %106 = vector.load %arg3[%c960, %c0_39] : memref<1712x64xbf16, #tpu.memory_space<vmem>>, vector<64x64xbf16>
    %107 = arith.truncf %105 : vector<6x64xf32> to vector<6x64xbf16>
    %cst_40 = arith.constant dense<0.000000e+00> : vector<6x64xf32>
    %108 = tpu.matmul %107, %106, %cst_40 {dimension_numbers = #tpu.dot_dimension_numbers<[1], [0], [0], [1], [0, 0, 1, 1], [], []>} : vector<6x64xbf16>, vector<64x64xbf16>, vector<6x64xf32> -> vector<6x64xf32>
    %c4 = arith.constant 4 : index
    %c0_41 = arith.constant 0 : index
    %109 = vector.load %arg4[%c4, %c0_41] : memref<24x64xf32, #tpu.memory_space<vmem>>, vector<1x64xf32>
    %110 = vector.broadcast %109 : vector<1x64xf32> to vector<6x64xf32>
    %111 = arith.addf %108, %110 : vector<6x64xf32>
    %112 = vector.extract_strided_slice %111 {offsets = [0, 0], sizes = [2, 64], strides = [1, 1]} : vector<6x64xf32> to vector<2x64xf32>
    %113 = arith.truncf %112 : vector<2x64xf32> to vector<2x64xbf16>
    %c1024 = arith.constant 1024 : index
    %c0_42 = arith.constant 0 : index
    %114 = vector.load %arg3[%c1024, %c0_42] : memref<1712x64xbf16, #tpu.memory_space<vmem>>, vector<64x64xbf16>
    %cst_43 = arith.constant dense<0.000000e+00> : vector<2x64xf32>
    %115 = tpu.matmul %113, %114, %cst_43 {dimension_numbers = #tpu.dot_dimension_numbers<[1], [0], [0], [1], [0, 0, 1, 1], [], []>} : vector<2x64xbf16>, vector<64x64xbf16>, vector<2x64xf32> -> vector<2x64xf32>
    %116 = vector.extract_strided_slice %111 {offsets = [2, 0], sizes = [2, 64], strides = [1, 1]} : vector<6x64xf32> to vector<2x64xf32>
    %117 = arith.truncf %116 : vector<2x64xf32> to vector<2x64xbf16>
    %c1088 = arith.constant 1088 : index
    %c0_44 = arith.constant 0 : index
    %118 = vector.load %arg3[%c1088, %c0_44] : memref<1712x64xbf16, #tpu.memory_space<vmem>>, vector<64x64xbf16>
    %cst_45 = arith.constant dense<0.000000e+00> : vector<2x64xf32>
    %119 = tpu.matmul %117, %118, %cst_45 {dimension_numbers = #tpu.dot_dimension_numbers<[1], [0], [0], [1], [0, 0, 1, 1], [], []>} : vector<2x64xbf16>, vector<64x64xbf16>, vector<2x64xf32> -> vector<2x64xf32>
    %120 = arith.addf %115, %119 : vector<2x64xf32>
    %121 = vector.extract_strided_slice %111 {offsets = [4, 0], sizes = [2, 64], strides = [1, 1]} : vector<6x64xf32> to vector<2x64xf32>
    %122 = arith.truncf %121 : vector<2x64xf32> to vector<2x64xbf16>
    %c1152 = arith.constant 1152 : index
    %c0_46 = arith.constant 0 : index
    %123 = vector.load %arg3[%c1152, %c0_46] : memref<1712x64xbf16, #tpu.memory_space<vmem>>, vector<64x64xbf16>
    %cst_47 = arith.constant dense<0.000000e+00> : vector<2x64xf32>
    %124 = tpu.matmul %122, %123, %cst_47 {dimension_numbers = #tpu.dot_dimension_numbers<[1], [0], [0], [1], [0, 0, 1, 1], [], []>} : vector<2x64xbf16>, vector<64x64xbf16>, vector<2x64xf32> -> vector<2x64xf32>
    %125 = arith.addf %120, %124 : vector<2x64xf32>
    %c5 = arith.constant 5 : index
    %c0_48 = arith.constant 0 : index
    %126 = vector.load %arg4[%c5, %c0_48] : memref<24x64xf32, #tpu.memory_space<vmem>>, vector<1x64xf32>
    %127 = vector.broadcast %126 : vector<1x64xf32> to vector<2x64xf32>
    %128 = arith.addf %125, %127 : vector<2x64xf32>
    %c6 = arith.constant 6 : index
    %c0_49 = arith.constant 0 : index
    %129 = vector.load %arg4[%c6, %c0_49] : memref<24x64xf32, #tpu.memory_space<vmem>>, vector<1x64xf32>
    %c7 = arith.constant 7 : index
    %c0_50 = arith.constant 0 : index
    %130 = vector.load %arg4[%c7, %c0_50] : memref<24x64xf32, #tpu.memory_space<vmem>>, vector<1x64xf32>
    %cst_51 = arith.constant dense<0.000000e+00> : vector<2xf32>
    %131 = vector.multi_reduction <add>, %128, %cst_51 [1] : vector<2x64xf32> to vector<2xf32>
    %132 = vector.shape_cast %131 : vector<2xf32> to vector<2x1xf32>
    %cst_52 = arith.constant 6.400000e+01 : f32
    %133 = vector.broadcast %cst_52 : f32 to vector<2x1xf32>
    %134 = arith.divf %132, %133 : vector<2x1xf32>
    %135 = vector.broadcast %134 : vector<2x1xf32> to vector<2x64xf32>
    %136 = arith.subf %128, %135 : vector<2x64xf32>
    %137 = arith.mulf %136, %136 : vector<2x64xf32>
    %cst_53 = arith.constant dense<0.000000e+00> : vector<2xf32>
    %138 = vector.multi_reduction <add>, %137, %cst_53 [1] : vector<2x64xf32> to vector<2xf32>
    %139 = vector.shape_cast %138 : vector<2xf32> to vector<2x1xf32>
    %cst_54 = arith.constant 6.400000e+01 : f32
    %140 = vector.broadcast %cst_54 : f32 to vector<2x1xf32>
    %141 = arith.divf %139, %140 : vector<2x1xf32>
    %142 = vector.broadcast %134 : vector<2x1xf32> to vector<2x64xf32>
    %143 = arith.subf %128, %142 : vector<2x64xf32>
    %cst_55 = arith.constant 9.99999974E-6 : f32
    %144 = vector.broadcast %cst_55 : f32 to vector<2x1xf32>
    %145 = arith.addf %141, %144 : vector<2x1xf32>
    %146 = math.rsqrt %145 : vector<2x1xf32>
    %147 = vector.broadcast %146 : vector<2x1xf32> to vector<2x64xf32>
    %148 = arith.mulf %143, %147 : vector<2x64xf32>
    %149 = vector.broadcast %129 : vector<1x64xf32> to vector<2x64xf32>
    %150 = arith.mulf %148, %149 : vector<2x64xf32>
    %151 = vector.broadcast %130 : vector<1x64xf32> to vector<2x64xf32>
    %152 = arith.addf %150, %151 : vector<2x64xf32>
    %cst_56 = arith.constant 5.000000e-01 : f32
    %153 = vector.broadcast %cst_56 : f32 to vector<2x64xf32>
    %154 = arith.mulf %153, %152 : vector<2x64xf32>
    %cst_57 = arith.constant 0.707106769 : f32
    %155 = vector.broadcast %cst_57 : f32 to vector<2x64xf32>
    %156 = arith.mulf %152, %155 : vector<2x64xf32>
    %157 = math.absf %156 : vector<2x64xf32>
    %cst_58 = arith.constant 0.327591091 : f32
    %158 = vector.broadcast %cst_58 : f32 to vector<2x64xf32>
    %159 = arith.mulf %158, %157 : vector<2x64xf32>
    %cst_59 = arith.constant 1.000000e+00 : f32
    %160 = vector.broadcast %cst_59 : f32 to vector<2x64xf32>
    %161 = arith.addf %160, %159 : vector<2x64xf32>
    %cst_60 = arith.constant 1.000000e+00 : f32
    %162 = vector.broadcast %cst_60 : f32 to vector<2x64xf32>
    %163 = arith.divf %162, %161 : vector<2x64xf32>
    %cst_61 = arith.constant 1.06140542 : f32
    %164 = vector.broadcast %cst_61 : f32 to vector<2x64xf32>
    %165 = arith.mulf %164, %163 : vector<2x64xf32>
    %cst_62 = arith.constant -1.45315206 : f32
    %166 = vector.broadcast %cst_62 : f32 to vector<2x64xf32>
    %167 = arith.addf %165, %166 : vector<2x64xf32>
    %168 = arith.mulf %167, %163 : vector<2x64xf32>
    %cst_63 = arith.constant 1.42141378 : f32
    %169 = vector.broadcast %cst_63 : f32 to vector<2x64xf32>
    %170 = arith.addf %168, %169 : vector<2x64xf32>
    %171 = arith.mulf %170, %163 : vector<2x64xf32>
    %cst_64 = arith.constant -0.284496725 : f32
    %172 = vector.broadcast %cst_64 : f32 to vector<2x64xf32>
    %173 = arith.addf %171, %172 : vector<2x64xf32>
    %174 = arith.mulf %173, %163 : vector<2x64xf32>
    %cst_65 = arith.constant 0.254829586 : f32
    %175 = vector.broadcast %cst_65 : f32 to vector<2x64xf32>
    %176 = arith.addf %174, %175 : vector<2x64xf32>
    %177 = arith.mulf %176, %163 : vector<2x64xf32>
    %cst_66 = arith.constant 0.000000e+00 : f32
    %178 = vector.broadcast %cst_66 : f32 to vector<2x64xf32>
    %179 = arith.subf %178, %157 : vector<2x64xf32>
    %180 = arith.mulf %179, %157 : vector<2x64xf32>
    %181 = math.exp %180 : vector<2x64xf32>
    %182 = arith.mulf %177, %181 : vector<2x64xf32>
    %cst_67 = arith.constant 1.000000e+00 : f32
    %183 = vector.broadcast %cst_67 : f32 to vector<2x64xf32>
    %184 = arith.subf %183, %182 : vector<2x64xf32>
    %cst_68 = arith.constant 0.000000e+00 : f32
    %185 = vector.broadcast %cst_68 : f32 to vector<2x64xf32>
    %186 = arith.cmpf oge, %156, %185 : vector<2x64xf32>
    %cst_69 = arith.constant 0.000000e+00 : f32
    %187 = vector.broadcast %cst_69 : f32 to vector<2x64xf32>
    %188 = arith.subf %187, %184 : vector<2x64xf32>
    %189 = arith.select %186, %184, %188 : vector<2x64xi1>, vector<2x64xf32>
    %cst_70 = arith.constant 1.000000e+00 : f32
    %190 = vector.broadcast %cst_70 : f32 to vector<2x64xf32>
    %191 = arith.addf %190, %189 : vector<2x64xf32>
    %192 = arith.mulf %154, %191 : vector<2x64xf32>
    %c1216 = arith.constant 1216 : index
    %c0_71 = arith.constant 0 : index
    %193 = vector.load %arg3[%c1216, %c0_71] : memref<1712x64xbf16, #tpu.memory_space<vmem>>, vector<64x64xbf16>
    %194 = arith.truncf %192 : vector<2x64xf32> to vector<2x64xbf16>
    %cst_72 = arith.constant dense<0.000000e+00> : vector<2x64xf32>
    %195 = tpu.matmul %194, %193, %cst_72 {dimension_numbers = #tpu.dot_dimension_numbers<[1], [0], [0], [1], [0, 0, 1, 1], [], []>} : vector<2x64xbf16>, vector<64x64xbf16>, vector<2x64xf32> -> vector<2x64xf32>
    %c8 = arith.constant 8 : index
    %c0_73 = arith.constant 0 : index
    %196 = vector.load %arg4[%c8, %c0_73] : memref<24x64xf32, #tpu.memory_space<vmem>>, vector<1x64xf32>
    %197 = vector.broadcast %196 : vector<1x64xf32> to vector<2x64xf32>
    %198 = arith.addf %195, %197 : vector<2x64xf32>
    %c1280 = arith.constant 1280 : index
    %c0_74 = arith.constant 0 : index
    %199 = vector.load %arg3[%c1280, %c0_74] : memref<1712x64xbf16, #tpu.memory_space<vmem>>, vector<64x64xbf16>
    %200 = arith.truncf %14 : vector<2x64xf32> to vector<2x64xbf16>
    %cst_75 = arith.constant dense<0.000000e+00> : vector<2x64xf32>
    %201 = tpu.matmul %200, %199, %cst_75 {dimension_numbers = #tpu.dot_dimension_numbers<[1], [0], [0], [1], [0, 0, 1, 1], [], []>} : vector<2x64xbf16>, vector<64x64xbf16>, vector<2x64xf32> -> vector<2x64xf32>
    %c9 = arith.constant 9 : index
    %c0_76 = arith.constant 0 : index
    %202 = vector.load %arg4[%c9, %c0_76] : memref<24x64xf32, #tpu.memory_space<vmem>>, vector<1x64xf32>
    %203 = vector.broadcast %202 : vector<1x64xf32> to vector<2x64xf32>
    %204 = arith.addf %201, %203 : vector<2x64xf32>
    %cst_77 = arith.constant 0.000000e+00 : f32
    %205 = vector.broadcast %cst_77 : f32 to vector<2x64xf32>
    %206 = arith.subf %205, %204 : vector<2x64xf32>
    %207 = math.exp %206 : vector<2x64xf32>
    %cst_78 = arith.constant 1.000000e+00 : f32
    %208 = vector.broadcast %cst_78 : f32 to vector<2x64xf32>
    %209 = arith.addf %208, %207 : vector<2x64xf32>
    %cst_79 = arith.constant 1.000000e+00 : f32
    %210 = vector.broadcast %cst_79 : f32 to vector<2x64xf32>
    %211 = arith.divf %210, %209 : vector<2x64xf32>
    %212 = arith.mulf %211, %198 : vector<2x64xf32>
    %cst_80 = arith.constant 1.000000e+00 : f32
    %213 = vector.broadcast %cst_80 : f32 to vector<2x64xf32>
    %214 = arith.subf %213, %211 : vector<2x64xf32>
    %215 = arith.mulf %214, %14 : vector<2x64xf32>
    %216 = arith.addf %212, %215 : vector<2x64xf32>
    %c1344 = arith.constant 1344 : index
    %c0_81 = arith.constant 0 : index
    %217 = vector.load %arg3[%c1344, %c0_81] : memref<1712x64xbf16, #tpu.memory_space<vmem>>, vector<64x64xbf16>
    %218 = arith.truncf %216 : vector<2x64xf32> to vector<2x64xbf16>
    %cst_82 = arith.constant dense<0.000000e+00> : vector<2x64xf32>
    %219 = tpu.matmul %218, %217, %cst_82 {dimension_numbers = #tpu.dot_dimension_numbers<[1], [0], [0], [1], [0, 0, 1, 1], [], []>} : vector<2x64xbf16>, vector<64x64xbf16>, vector<2x64xf32> -> vector<2x64xf32>
    %c10 = arith.constant 10 : index
    %c0_83 = arith.constant 0 : index
    %220 = vector.load %arg4[%c10, %c0_83] : memref<24x64xf32, #tpu.memory_space<vmem>>, vector<1x64xf32>
    %221 = vector.broadcast %220 : vector<1x64xf32> to vector<2x64xf32>
    %222 = arith.addf %219, %221 : vector<2x64xf32>
    %223 = vector.extract_strided_slice %222 {offsets = [0, 0], sizes = [2, 32], strides = [1, 1]} : vector<2x64xf32> to vector<2x32xf32>
    %c11 = arith.constant 11 : index
    %c0_84 = arith.constant 0 : index
    %224 = vector.load %arg4[%c11, %c0_84] : memref<24x64xf32, #tpu.memory_space<vmem>>, vector<1x64xf32>
    %225 = vector.extract_strided_slice %224 {offsets = [0, 0], sizes = [1, 32], strides = [1, 1]} : vector<1x64xf32> to vector<1x32xf32>
    %c12 = arith.constant 12 : index
    %c0_85 = arith.constant 0 : index
    %226 = vector.load %arg4[%c12, %c0_85] : memref<24x64xf32, #tpu.memory_space<vmem>>, vector<1x64xf32>
    %227 = vector.extract_strided_slice %226 {offsets = [0, 0], sizes = [1, 32], strides = [1, 1]} : vector<1x64xf32> to vector<1x32xf32>
    %cst_86 = arith.constant dense<0.000000e+00> : vector<2xf32>
    %228 = vector.multi_reduction <add>, %223, %cst_86 [1] : vector<2x32xf32> to vector<2xf32>
    %229 = vector.shape_cast %228 : vector<2xf32> to vector<2x1xf32>
    %cst_87 = arith.constant 3.200000e+01 : f32
    %230 = vector.broadcast %cst_87 : f32 to vector<2x1xf32>
    %231 = arith.divf %229, %230 : vector<2x1xf32>
    %232 = vector.broadcast %231 : vector<2x1xf32> to vector<2x32xf32>
    %233 = arith.subf %223, %232 : vector<2x32xf32>
    %234 = arith.mulf %233, %233 : vector<2x32xf32>
    %cst_88 = arith.constant dense<0.000000e+00> : vector<2xf32>
    %235 = vector.multi_reduction <add>, %234, %cst_88 [1] : vector<2x32xf32> to vector<2xf32>
    %236 = vector.shape_cast %235 : vector<2xf32> to vector<2x1xf32>
    %cst_89 = arith.constant 3.200000e+01 : f32
    %237 = vector.broadcast %cst_89 : f32 to vector<2x1xf32>
    %238 = arith.divf %236, %237 : vector<2x1xf32>
    %239 = vector.broadcast %231 : vector<2x1xf32> to vector<2x32xf32>
    %240 = arith.subf %223, %239 : vector<2x32xf32>
    %cst_90 = arith.constant 9.99999974E-6 : f32
    %241 = vector.broadcast %cst_90 : f32 to vector<2x1xf32>
    %242 = arith.addf %238, %241 : vector<2x1xf32>
    %243 = math.rsqrt %242 : vector<2x1xf32>
    %244 = vector.broadcast %243 : vector<2x1xf32> to vector<2x32xf32>
    %245 = arith.mulf %240, %244 : vector<2x32xf32>
    %246 = vector.broadcast %225 : vector<1x32xf32> to vector<2x32xf32>
    %247 = arith.mulf %245, %246 : vector<2x32xf32>
    %248 = vector.broadcast %227 : vector<1x32xf32> to vector<2x32xf32>
    %249 = arith.addf %247, %248 : vector<2x32xf32>
    %cst_91 = arith.constant 0.000000e+00 : f32
    %250 = vector.broadcast %cst_91 : f32 to vector<2x32xf32>
    %251 = arith.maximumf %249, %250 : vector<2x32xf32>
    %c1408 = arith.constant 1408 : index
    %c0_92 = arith.constant 0 : index
    %252 = vector.load %arg3[%c1408, %c0_92] : memref<1712x64xbf16, #tpu.memory_space<vmem>>, vector<32x64xbf16>
    %253 = arith.truncf %251 : vector<2x32xf32> to vector<2x32xbf16>
    %cst_93 = arith.constant dense<0.000000e+00> : vector<2x64xf32>
    %254 = tpu.matmul %253, %252, %cst_93 {dimension_numbers = #tpu.dot_dimension_numbers<[1], [0], [0], [1], [0, 0, 1, 1], [], []>} : vector<2x32xbf16>, vector<32x64xbf16>, vector<2x64xf32> -> vector<2x64xf32>
    %c13 = arith.constant 13 : index
    %c0_94 = arith.constant 0 : index
    %255 = vector.load %arg4[%c13, %c0_94] : memref<24x64xf32, #tpu.memory_space<vmem>>, vector<1x64xf32>
    %256 = vector.broadcast %255 : vector<1x64xf32> to vector<2x64xf32>
    %257 = arith.addf %254, %256 : vector<2x64xf32>
    %258 = vector.extract_strided_slice %257 {offsets = [0, 0], sizes = [2, 16], strides = [1, 1]} : vector<2x64xf32> to vector<2x16xf32>
    %c14 = arith.constant 14 : index
    %c0_95 = arith.constant 0 : index
    %259 = vector.load %arg4[%c14, %c0_95] : memref<24x64xf32, #tpu.memory_space<vmem>>, vector<1x64xf32>
    %260 = vector.extract_strided_slice %259 {offsets = [0, 0], sizes = [1, 16], strides = [1, 1]} : vector<1x64xf32> to vector<1x16xf32>
    %c15 = arith.constant 15 : index
    %c0_96 = arith.constant 0 : index
    %261 = vector.load %arg4[%c15, %c0_96] : memref<24x64xf32, #tpu.memory_space<vmem>>, vector<1x64xf32>
    %262 = vector.extract_strided_slice %261 {offsets = [0, 0], sizes = [1, 16], strides = [1, 1]} : vector<1x64xf32> to vector<1x16xf32>
    %cst_97 = arith.constant dense<0.000000e+00> : vector<2xf32>
    %263 = vector.multi_reduction <add>, %258, %cst_97 [1] : vector<2x16xf32> to vector<2xf32>
    %264 = vector.shape_cast %263 : vector<2xf32> to vector<2x1xf32>
    %cst_98 = arith.constant 1.600000e+01 : f32
    %265 = vector.broadcast %cst_98 : f32 to vector<2x1xf32>
    %266 = arith.divf %264, %265 : vector<2x1xf32>
    %267 = vector.broadcast %266 : vector<2x1xf32> to vector<2x16xf32>
    %268 = arith.subf %258, %267 : vector<2x16xf32>
    %269 = arith.mulf %268, %268 : vector<2x16xf32>
    %cst_99 = arith.constant dense<0.000000e+00> : vector<2xf32>
    %270 = vector.multi_reduction <add>, %269, %cst_99 [1] : vector<2x16xf32> to vector<2xf32>
    %271 = vector.shape_cast %270 : vector<2xf32> to vector<2x1xf32>
    %cst_100 = arith.constant 1.600000e+01 : f32
    %272 = vector.broadcast %cst_100 : f32 to vector<2x1xf32>
    %273 = arith.divf %271, %272 : vector<2x1xf32>
    %274 = vector.broadcast %266 : vector<2x1xf32> to vector<2x16xf32>
    %275 = arith.subf %258, %274 : vector<2x16xf32>
    %cst_101 = arith.constant 9.99999974E-6 : f32
    %276 = vector.broadcast %cst_101 : f32 to vector<2x1xf32>
    %277 = arith.addf %273, %276 : vector<2x1xf32>
    %278 = math.rsqrt %277 : vector<2x1xf32>
    %279 = vector.broadcast %278 : vector<2x1xf32> to vector<2x16xf32>
    %280 = arith.mulf %275, %279 : vector<2x16xf32>
    %281 = vector.broadcast %260 : vector<1x16xf32> to vector<2x16xf32>
    %282 = arith.mulf %280, %281 : vector<2x16xf32>
    %283 = vector.broadcast %262 : vector<1x16xf32> to vector<2x16xf32>
    %284 = arith.addf %282, %283 : vector<2x16xf32>
    %cst_102 = arith.constant 0.000000e+00 : f32
    %285 = vector.broadcast %cst_102 : f32 to vector<2x16xf32>
    %286 = arith.maximumf %284, %285 : vector<2x16xf32>
    %c1440 = arith.constant 1440 : index
    %c0_103 = arith.constant 0 : index
    %287 = vector.load %arg3[%c1440, %c0_103] : memref<1712x64xbf16, #tpu.memory_space<vmem>>, vector<16x64xbf16>
    %288 = arith.truncf %286 : vector<2x16xf32> to vector<2x16xbf16>
    %cst_104 = arith.constant dense<0.000000e+00> : vector<2x64xf32>
    %289 = tpu.matmul %288, %287, %cst_104 {dimension_numbers = #tpu.dot_dimension_numbers<[1], [0], [0], [1], [0, 0, 1, 1], [], []>} : vector<2x16xbf16>, vector<16x64xbf16>, vector<2x64xf32> -> vector<2x64xf32>
    %290 = vector.extract_strided_slice %289 {offsets = [0, 0], sizes = [2, 1], strides = [1, 1]} : vector<2x64xf32> to vector<2x1xf32>
    %c16 = arith.constant 16 : index
    %c0_105 = arith.constant 0 : index
    %291 = vector.load %arg4[%c16, %c0_105] : memref<24x64xf32, #tpu.memory_space<vmem>>, vector<1x64xf32>
    %292 = vector.extract_strided_slice %291 {offsets = [0, 0], sizes = [1, 1], strides = [1, 1]} : vector<1x64xf32> to vector<1x1xf32>
    %293 = vector.broadcast %292 : vector<1x1xf32> to vector<2x1xf32>
    %294 = arith.addf %290, %293 : vector<2x1xf32>
    %cst_106 = arith.constant 0.000000e+00 : f32
    %295 = vector.broadcast %cst_106 : f32 to vector<2x1xf32>
    %296 = arith.subf %295, %294 : vector<2x1xf32>
    %297 = math.exp %296 : vector<2x1xf32>
    %cst_107 = arith.constant 1.000000e+00 : f32
    %298 = vector.broadcast %cst_107 : f32 to vector<2x1xf32>
    %299 = arith.addf %298, %297 : vector<2x1xf32>
    %cst_108 = arith.constant 1.000000e+00 : f32
    %300 = vector.broadcast %cst_108 : f32 to vector<2x1xf32>
    %301 = arith.divf %300, %299 : vector<2x1xf32>
    %302 = tpu.concatenate %216, %14 in 0 : vector<2x64xf32>, vector<2x64xf32> -> vector<4x64xf32>
    %c1456 = arith.constant 1456 : index
    %c0_109 = arith.constant 0 : index
    %303 = vector.load %arg3[%c1456, %c0_109] : memref<1712x64xbf16, #tpu.memory_space<vmem>>, vector<64x64xbf16>
    %304 = arith.truncf %302 : vector<4x64xf32> to vector<4x64xbf16>
    %cst_110 = arith.constant dense<0.000000e+00> : vector<4x64xf32>
    %305 = tpu.matmul %304, %303, %cst_110 {dimension_numbers = #tpu.dot_dimension_numbers<[1], [0], [0], [1], [0, 0, 1, 1], [], []>} : vector<4x64xbf16>, vector<64x64xbf16>, vector<4x64xf32> -> vector<4x64xf32>
    %c17 = arith.constant 17 : index
    %c0_111 = arith.constant 0 : index
    %306 = vector.load %arg4[%c17, %c0_111] : memref<24x64xf32, #tpu.memory_space<vmem>>, vector<1x64xf32>
    %307 = vector.broadcast %306 : vector<1x64xf32> to vector<4x64xf32>
    %308 = arith.addf %305, %307 : vector<4x64xf32>
    %cst_112 = arith.constant 0.000000e+00 : f32
    %309 = vector.broadcast %cst_112 : f32 to vector<4x64xf32>
    %310 = arith.maximumf %308, %309 : vector<4x64xf32>
    %c1520 = arith.constant 1520 : index
    %c0_113 = arith.constant 0 : index
    %311 = vector.load %arg3[%c1520, %c0_113] : memref<1712x64xbf16, #tpu.memory_space<vmem>>, vector<64x64xbf16>
    %312 = arith.truncf %310 : vector<4x64xf32> to vector<4x64xbf16>
    %cst_114 = arith.constant dense<0.000000e+00> : vector<4x64xf32>
    %313 = tpu.matmul %312, %311, %cst_114 {dimension_numbers = #tpu.dot_dimension_numbers<[1], [0], [0], [1], [0, 0, 1, 1], [], []>} : vector<4x64xbf16>, vector<64x64xbf16>, vector<4x64xf32> -> vector<4x64xf32>
    %c18 = arith.constant 18 : index
    %c0_115 = arith.constant 0 : index
    %314 = vector.load %arg4[%c18, %c0_115] : memref<24x64xf32, #tpu.memory_space<vmem>>, vector<1x64xf32>
    %315 = vector.broadcast %314 : vector<1x64xf32> to vector<4x64xf32>
    %316 = arith.addf %313, %315 : vector<4x64xf32>
    %cst_116 = arith.constant 0.000000e+00 : f32
    %317 = vector.broadcast %cst_116 : f32 to vector<4x64xf32>
    %318 = arith.subf %317, %316 : vector<4x64xf32>
    %319 = math.exp %318 : vector<4x64xf32>
    %cst_117 = arith.constant 1.000000e+00 : f32
    %320 = vector.broadcast %cst_117 : f32 to vector<4x64xf32>
    %321 = arith.addf %320, %319 : vector<4x64xf32>
    %cst_118 = arith.constant 1.000000e+00 : f32
    %322 = vector.broadcast %cst_118 : f32 to vector<4x64xf32>
    %323 = arith.divf %322, %321 : vector<4x64xf32>
    %324 = vector.extract_strided_slice %323 {offsets = [0, 0], sizes = [2, 3], strides = [1, 1]} : vector<4x64xf32> to vector<2x3xf32>
    %cst_119 = arith.constant dense<0.000000e+00> : vector<2xf32>
    %325 = vector.multi_reduction <add>, %324, %cst_119 [1] : vector<2x3xf32> to vector<2xf32>
    %326 = vector.shape_cast %325 : vector<2xf32> to vector<2x1xf32>
    %cst_120 = arith.constant 0.333333343 : f32
    %327 = vector.broadcast %cst_120 : f32 to vector<2x1xf32>
    %328 = arith.mulf %326, %327 : vector<2x1xf32>
    %329 = vector.extract_strided_slice %323 {offsets = [2, 3], sizes = [2, 1], strides = [1, 1]} : vector<4x64xf32> to vector<2x1xf32>
    %cst_121 = arith.constant 0.699999988 : f32
    %330 = vector.broadcast %cst_121 : f32 to vector<2x1xf32>
    %331 = arith.mulf %330, %301 : vector<2x1xf32>
    %cst_122 = arith.constant 3.000000e-01 : f32
    %332 = vector.broadcast %cst_122 : f32 to vector<2x1xf32>
    %333 = arith.mulf %332, %328 : vector<2x1xf32>
    %334 = arith.addf %331, %333 : vector<2x1xf32>
    %cst_123 = arith.constant 1.000000e+00 : f32
    %335 = vector.broadcast %cst_123 : f32 to vector<2x1xf32>
    %336 = arith.mulf %334, %335 : vector<2x1xf32>
    %337 = arith.addf %336, %329 : vector<2x1xf32>
    %cst_124 = arith.constant 0.000000e+00 : f32
    %338 = vector.broadcast %cst_124 : f32 to vector<2x1xf32>
    %339 = arith.subf %338, %337 : vector<2x1xf32>
    %340 = math.exp %339 : vector<2x1xf32>
    %cst_125 = arith.constant 1.000000e+00 : f32
    %341 = vector.broadcast %cst_125 : f32 to vector<2x1xf32>
    %342 = arith.addf %341, %340 : vector<2x1xf32>
    %cst_126 = arith.constant 1.000000e+00 : f32
    %343 = vector.broadcast %cst_126 : f32 to vector<2x1xf32>
    %344 = arith.divf %343, %342 : vector<2x1xf32>
    %345 = tpu.concatenate %26, %38 in 1 : vector<2x64xf32>, vector<2x64xf32> -> vector<2x128xf32>
    %c0_127 = arith.constant 0 : index
    %c0_128 = arith.constant 0 : index
    %346 = vector.load %arg5[%c0_127, %c0_128] : memref<2x384xf32, #tpu.memory_space<vmem>>, vector<2x128xf32>
    tpu.vector_store %arg5[%c0_127, %c0_128], %345 {strides = array<i32>} : memref<2x384xf32, #tpu.memory_space<vmem>>, vector<2x128xf32>,
    %347 = tpu.concatenate %216, %14 in 1 : vector<2x64xf32>, vector<2x64xf32> -> vector<2x128xf32>
    %c0_129 = arith.constant 0 : index
    %c128 = arith.constant 128 : index
    %348 = vector.load %arg5[%c0_129, %c128] : memref<2x384xf32, #tpu.memory_space<vmem>>, vector<2x128xf32>
    tpu.vector_store %arg5[%c0_129, %c128], %347 {strides = array<i32>} : memref<2x384xf32, #tpu.memory_space<vmem>>, vector<2x128xf32>,
    %349 = vector.shape_cast %344 : vector<2x1xf32> to vector<2x1xf32>
    %350 = vector.broadcast %349 : vector<2x1xf32> to vector<2x128xf32>
    %c0_130 = arith.constant 0 : index
    %c256 = arith.constant 256 : index
    %351 = vector.load %arg5[%c0_130, %c256] : memref<2x384xf32, #tpu.memory_space<vmem>>, vector<2x128xf32>
    tpu.vector_store %arg5[%c0_130, %c256], %350 {strides = array<i32>} : memref<2x384xf32, #tpu.memory_space<vmem>>, vector<2x128xf32>,
    return
  }
}

</mosaic_0001>

<bundles_post_ra>
// kernel: lightweight_anomaly_detector_forward.1
= control target key start
LH: loop header
LB: loop body
LE: loop exit
PB: predicated region body
PF: predicated region fallthrough
CT: control target
= control target key end

     0   :  { %v3020_v21 = vmov 1983009808   ;;  %v125_v23 = vlaneseq  ;;  %vm583_vm0 = vcmask 523264   ;;  %vm585_vm1 = vcmask 519168   ;;  %s3681_s3 = inlined_call_operand.vmem [shape: bf16[1712,64], index: 3, kind: input, shape index: {}]   ;;  %s3682_s0 = inlined_call_operand.vmem [shape: f32[2,768], index: 0, kind: input, shape index: {}]   ;;  %s3683_s1 = inlined_call_operand.vmem [shape: f32[2,12,64], index: 1, kind: input, shape index: {}]   ;;  %s3684_s2 = inlined_call_operand.vmem [shape: f32[2,12,64], index: 2, kind: input, shape index: {}]   ;;  %s3685_s4 = inlined_call_operand.vmem [shape: f32[24,64], index: 4, kind: input, shape index: {}]   ;;  %s3686_s5 = inlined_call_operand.vmem [shape: f32[2,384], index: 5, kind: output, shape index: {}]  }
   0x1   :  { %v2872_v0 = vld [vmem:[%s3681_s3 + $0x40] sm:$0xff]   ;;  %v2876_v4 = vld [vmem:[%s3681_s3 + $0x48] sm:$0xff]   ;;  %v2880_v8 = vld [vmem:[%s3681_s3 + $0x50] sm:$0xff]   ;;  %v123_v22 = vunpack.c.l.s4 %v3020_v21  ;;  %vm610_vm2 = vcmask 1041409   ;;  %vm572_vm3 = vcmask 517120   ;;  %vm3022_vm4 = vmmov 0  }
   0x2   :  { %v2873_v1 = vld [vmem:[%s3681_s3] sm:$0xff]   ;;  %2473 = vmatprep.subr.bf16.mxu0 %v2872_v0  ;;  %v2877_v5 = vld [vmem:[%s3681_s3 + $0x8] sm:$0xff]   ;;  %v2881_v9 = vld [vmem:[%s3681_s3 + $0x10] sm:$0xff]   ;;  %v126_v29 = vshrl.u32 %v125_v23, 7  ;;  %vm669_vm5 = vcmask 1043459   ;;  %vm676_vm6 = vcmask 1045509  }
   0x3   :  { %v2874_v2 = vld [vmem:[%s3681_s3 + $0xc0] sm:$0xff]   ;;  %2474 = vmatpush3.bf16.msra.mxu0 %v2873_v1  ;;  %v2878_v6 = vld [vmem:[%s3681_s3 + $0xc8] sm:$0xff]   ;;  %v2882_v10 = vld [vmem:[%s3681_s3 + $0xd0] sm:$0xff]   ;;  %v124_v28 = vunpack.c.0.s8 %v123_v22  ;;  %vm679_vm7 = vcmask 1041408   ;;  %vm681_vm8 = vcmask 1043456   ;;  %vm1923_vm10 = vcmask 254976  }
   0x4   :  { %v2875_v3 = vld [vmem:[%s3681_s3 + $0x80] sm:$0xff]   ;;  %2495 = vmatprep.subr.bf16.mxu1 %v2874_v2  ;;  %2475 = vmatprep.subr.bf16.mxu0 %v2876_v4  ;;  %v2879_v7 = vld [vmem:[%s3681_s3 + $0x88] sm:$0xff]   ;;  %v2883_v11 = vld [vmem:[%s3681_s3 + $0x90] sm:$0xff]   ;;  %vm1971_vm11 = vcmask 261120   ;;  %vm2017_vm12 = vcmask 123904   ;;  %vm2052_vm13 = vcmask 130048  }
   0x5   :  { %2496 = vmatpush3.bf16.msra.mxu1 %v2875_v3  ;;  %v2884_v12 = vld [vmem:[%s3681_s3 + $0x58] sm:$0xff]   ;;  %v2888_v16 = vld [vmem:[%s3681_s3 + $0x60] sm:$0xff]   ;;  %v2892_v20 = vld [vmem:[%s3681_s3 + $0x68] sm:$0xff]   ;;  %v127_v34 = vsub.s32 %v124_v28, %v126_v29  ;;  %vm2281_vm14 = vcmask 17408  }
   0x6   :  { %2497 = vmatprep.subr.bf16.mxu1 %v2878_v6  ;;  %v2885_v13 = vld [vmem:[%s3681_s3 + $0x18] sm:$0xff]   ;;  %v2889_v17 = vld [vmem:[%s3681_s3 + $0x20] sm:$0xff]   ;;  %v2893_v24 = vld [vmem:[%s3681_s3 + $0x28] sm:$0xff]  }
   0x7   :  { %2476 = vmatpush3.bf16.msra.mxu0 %v2877_v5  ;;  %v2886_v14 = vld [vmem:[%s3681_s3 + $0xd8] sm:$0xff]   ;;  %v2890_v18 = vld [vmem:[%s3681_s3 + $0xe0] sm:$0xff]   ;;  %v2894_v25 = vld [vmem:[%s3681_s3 + $0xe8] sm:$0xff]  }
   0x8   :  { %2477 = vmatprep.subr.bf16.mxu0 %v2880_v8  ;;  %v2887_v15 = vld [vmem:[%s3681_s3 + $0x98] sm:$0xff]   ;;  %v2891_v19 = vld [vmem:[%s3681_s3 + $0xa0] sm:$0xff]   ;;  %v2895_v26 = vld [vmem:[%s3681_s3 + $0xa8] sm:$0xff]  }
   0x9   :  { %2498 = vmatpush3.bf16.msra.mxu1 %v2879_v7  ;;  %v2896_v27 = vld [vmem:[%s3681_s3 + $0x70] sm:$0xff]   ;;  %v2900_v33 = vld [vmem:[%s3681_s3 + $0x78] sm:$0xff]   ;;  %v21_v37 = vld [vmem:[%s3682_s0] sm:$0xff] }
   0xa   :  { %2499 = vmatprep.subr.bf16.mxu1 %v2882_v10  ;;  %v2897_v30 = vld [vmem:[%s3681_s3 + $0x30] sm:$0xff]   ;;  %v2901_v35 = vld [vmem:[%s3681_s3 + $0x38] sm:$0xff]   ;;  %v128_v38 = vrot.slane %v21_v37, %v127_v34  ;;  %v121_v40 = vcombine.high %v21_v37, %v21_v37  ;;  %v2904_v41 = vld [vmem:[%s3681_s3 + $0x140] sm:$0xff]  }
   0xb   :  { %2478 = vmatpush3.bf16.msra.mxu0 %v2881_v9  ;;  %v2898_v31 = vld [vmem:[%s3681_s3 + $0xf0] sm:$0xff]   ;;  %v2902_v36 = vld [vmem:[%s3681_s3 + $0xf8] sm:$0xff]   ;;  %v2906_v47 = vld [vmem:[%s3681_s3 + $0x100] sm:$0xff]  }
   0xc   :  { %2479 = vmatprep.subr.bf16.mxu0 %v2884_v12  ;;  %v2899_v32 = vld [vmem:[%s3681_s3 + $0xb0] sm:$0xff]   ;;  %v2903_v39 = vld [vmem:[%s3681_s3 + $0xb8] sm:$0xff]   ;;  %v136_v42 = vcombine.high %v128_v38, %v128_v38  ;;  %v135_v43 = vrot.slane %v121_v40, %v127_v34  ;;  %v152_v44 = vpack.c.bf16 %v128_v38, %v128_v38  ;;  %v2907_v49 = vld [vmem:[%s3681_s3 + $0x148] sm:$0xff]  }
   0xd   :  { %2500 = vmatpush3.bf16.msra.mxu1 %v2883_v11  ;;  %v2908_v51 = vld [vmem:[%s3681_s3 + $0x108] sm:$0xff]   ;;  %v2909_v52 = vld [vmem:[%s3681_s3 + $0x150] sm:$0xff]   ;;  %v2911_v54 = vld [vmem:[%s3681_s3 + $0x158] sm:$0xff]  }
   0xe   :  { %2501 = vmatprep.subr.bf16.mxu1 %v2886_v14  ;;  %v153_v45 = vpack.c.bf16 %v136_v42, %v136_v42  ;;  %v137_v46 = vcombine.high %v135_v43, %v135_v43  ;;  %v154_v48 = vpack.c.bf16 %v135_v43, %v135_v43  ;;  %v2910_v53 = vld [vmem:[%s3681_s3 + $0x110] sm:$0xff]   ;;  %v2912_v55 = vld [vmem:[%s3681_s3 + $0x118] sm:$0xff]   ;;  %v2913_v56 = vld [vmem:[%s3681_s3 + $0x160] sm:$0xff]  }
   0xf   :  { %2480 = vmatpush3.bf16.msra.mxu0 %v2885_v13  ;;  %v2326_v57 = vld.sshfl [vmem:[%s3682_s0 + $0x8] sm:$0x33 pattern:$0x76325410]  ;;  %v2914_v59 = vld [vmem:[%s3681_s3 + $0x120] sm:$0xff]   ;;  %v2917_v63 = vld [vmem:[%s3681_s3 + $0x170] sm:$0xff]  }
  0x10   :  { %2481 = vmatprep.subr.bf16.mxu0 %v2888_v16  ;;  %483 = vmatprep.mubr.bf16.mxu0 %v153_v45  ;;  %v155_v50 = vpack.c.bf16 %v137_v46, %v137_v46  ;;  %v145_v58 = vcombine.high %v2326_v57, %v2326_v57  ;;  %v2915_v60 = vld [vmem:[%s3681_s3 + $0x168] sm:$0xff]   ;;  %v2918_v0 = vld [vmem:[%s3681_s3 + $0x130] sm:$0xff]   ;;  %v2919_v1 = vld [vmem:[%s3681_s3 + $0x178] sm:$0xff]   ;;  %v156_v3 = vpack.c.bf16 %v2326_v57, %v2326_v57 }
  0x11   :  { %2502 = vmatpush3.bf16.msra.mxu1 %v2887_v15  ;;  %v2916_v62 = vld [vmem:[%s3681_s3 + $0x128] sm:$0xff]   ;;  %v2920_v2 = vld [vmem:[%s3681_s3 + $0x138] sm:$0xff]   ;;  %v579_v4 = vld [vmem:[%s3683_s1] sm:$0xff] }
  0x12   :  { %2503 = vmatprep.subr.bf16.mxu1 %v2890_v18  ;;  %523 = vmatprep.mubr.bf16.mxu1 %v155_v50  ;;  %v157_v61 = vpack.c.bf16 %v145_v58, %v145_v58  ;;  %v580_v5 = vld [vmem:[%s3683_s1 + $0x8] sm:$0xf]  ;;  %v581_v6 = vld [vmem:[%s3683_s1 + $0x10] sm:$0xff]  ;;  %v582_v7 = vld [vmem:[%s3683_s1 + $0x18] sm:$0xf]  ;;  %v584_v8 = vsel %vm583_vm0, %v579_v4, 0.0 }
  0x13   :  { %2482 = vmatpush3.bf16.msra.mxu0 %v2889_v17  ;;  %v586_v9 = vsel %vm585_vm1, %v580_v5, 0.0  ;;  %v594_v10 = vsel %vm583_vm0, %v581_v6, 0.0  ;;  %v595_v12 = vsel %vm585_vm1, %v582_v7, 0.0  ;;  %v624_v15 = vld [vmem:[%s3684_s2] sm:$0xff]  ;;  %v625_v16 = vld [vmem:[%s3684_s2 + $0x8] sm:$0xf] }
  0x14   :  { %2483 = vmatprep.subr.bf16.mxu0 %v2892_v20  ;;  %v587_v11 = vadd.f32 %v586_v9, %v584_v8  ;;  %v596_v13 = vadd.f32 %v595_v12, %v594_v10  ;;  %v626_v17 = vld [vmem:[%s3684_s2 + $0x10] sm:$0xff]  ;;  %v628_v20 = vsel %vm583_vm0, %v624_v15, 0.0  ;;  %v629_v21 = vsel %vm585_vm1, %v625_v16, 0.0 }
  0x15   :  { %2504 = vmatpush3.bf16.msra.mxu1 %v2891_v19  ;;  %v627_v19 = vld [vmem:[%s3684_s2 + $0x18] sm:$0xf]  ;;  %v637_v22 = vsel %vm583_vm0, %v626_v17, 0.0 }
  0x16   :  { %2505 = vmatprep.subr.bf16.mxu1 %v2894_v25  ;;  %v588_v14 = vrot.slane %v587_v11, 4  ;;  %v597_v18 = vrot.slane %v596_v13, 4  ;;  %v638_v25 = vsel %vm585_vm1, %v627_v19, 0.0 }
  0x17   :  { %2484 = vmatpush3.bf16.msra.mxu0 %v2893_v24  ;;  %v630_v24 = vadd.f32 %v629_v21, %v628_v20 }
  0x18   :  { %2485 = vmatprep.subr.bf16.mxu0 %v2896_v27  ;;  %v589_v23 = vadd.f32 %v588_v14, %v587_v11  ;;  %v639_v27 = vadd.f32 %v638_v25, %v637_v22  ;;  %v2921_v22 = vld [vmem:[%s3681_s3 + $0x180] sm:$0xff]  }
  0x19   :  { %2506 = vmatpush3.bf16.msra.mxu1 %v2895_v26  ;;  %v598_v26 = vadd.f32 %v597_v18, %v596_v13  ;;  %v631_v29 = vrot.slane %v630_v24, 4 }
  0x1a   :  { %2507 = vmatprep.subr.bf16.mxu1 %v2898_v31  ;;  %v590_v28 = vrot.slane %v589_v23, 2  ;;  %v640_v31 = vrot.slane %v639_v27, 4 }
  0x1b   :  { %2486 = vmatpush3.bf16.msra.mxu0 %v2897_v30  ;;  %v599_v30 = vrot.slane %v598_v26, 2 }
  0x1c   :  { %2487 = vmatprep.subr.bf16.mxu0 %v2900_v33  ;;  %v632_v33 = vadd.f32 %v631_v29, %v630_v24  ;;  %v2922_v24 = vld [vmem:[%s3681_s3 + $0x1c0] sm:$0xff]  }
  0x1d   :  { %2508 = vmatpush3.bf16.msra.mxu1 %v2899_v32  ;;  %v591_v32 = vadd.f32 %v590_v28, %v589_v23  ;;  %v600_v34 = vadd.f32 %v599_v30, %v598_v26  ;;  %v3021_v23 = vmov 0.0   ;;  %v2924_v28 = vld [vmem:[%s3681_s3 + $0x1c8] sm:$0xff]  }
  0x1e   :  { %2509 = vmatprep.subr.bf16.mxu1 %v2902_v36  ;;  %v633_v37 = vrot.slane %v632_v33, 2 }
  0x1f   :  { %2488 = vmatpush3.bf16.msra.mxu0 %v2901_v35  ;;  %v641_v35 = vadd.f32 %v640_v31, %v639_v27  ;;  %v592_v36 = vrot.slane %v591_v32, 1  ;;  %v601_v38 = vrot.slane %v600_v34, 1  ;;  %v2923_v27 = vld [vmem:[%s3681_s3 + $0x188] sm:$0xff]  }
  0x20   :  { %2517 = vmatprep.subr.bf16.mxu0 %v2904_v41  ;;  %v634_v41 = vadd.f32 %v633_v37, %v632_v33  ;;  %v2926_v33 = vld [vmem:[%s3681_s3 + $0x1d0] sm:$0xff]   ;;  %v2927_v37 = vld [vmem:[%s3681_s3 + $0x198] sm:$0xff]  }
  0x21   :  { %2510 = vmatpush3.bf16.msra.mxu1 %v2903_v39  ;;  %v642_v39 = vrot.slane %v641_v35, 2  ;;  %v593_v40 = vadd.f32 %v592_v36, %v591_v32  ;;  %v602_v42 = vadd.f32 %v601_v38, %v600_v34  ;;  %v2925_v32 = vld [vmem:[%s3681_s3 + $0x190] sm:$0xff]   ;;  %v2928_v38 = vld [vmem:[%s3681_s3 + $0x1d8] sm:$0xff]  }
  0x22   :  { %484 = vmatmul.mubr.bf16.vlgmr.msra.gmra.mrb[0].mxu0 %v152_v44  ;;  %v635_v45 = vrot.slane %v634_v41, 1  ;;  %2634 = vmatprep.subr.bf16.mxu1 %v3021_v23 }
  0x23   :  { %2518 = vmatpush3.bf16.msra.mxu0 %v2906_v47  ;;  %563 = vmatprep.mubr.bf16.mxu0 %v157_v61  ;;  %v643_v43 = vadd.f32 %v642_v39, %v641_v35  ;;  %v3238_v44 = vmul.f32 0.083333336, %v593_v40  ;;  %v605_v46 = vmul.f32 0.083333336, %v602_v42  ;;  %v2327_v61 = vld [vmem:[%s3685_s4] ss:$0 sm:$0xff] }
  0x24   :  { %524 = vmatmul.mubr.bf16.vlgmr.msra.gmra.mrb[0].mxu1 %v154_v48  ;;  %2519 = vmatprep.subr.bf16.mxu0 %v2907_v49  ;;  %v636_v49 = vadd.f32 %v635_v45, %v634_v41 }
  0x25   :  { %v644_v47 = vrot.slane %v643_v43, 1  ;;  %v606_v48 = vmul.f32 %v3238_v44, %v3238_v44  ;;  %v607_v50 = vmul.f32 %v605_v46, %v605_v46  ;;  %2635 = vmatpush3.bf16.msra.mxu1 %v2921_v22  ;;  %2642 = vmatprep.mubr.msk.bf16.mxu1 %vm3022_vm4, %v3021_v23 }
  0x26   :  { %2636 = vmatprep.subr.bf16.mxu1 %v3021_v23 }
  0x27   :  { %2520 = vmatpush3.bf16.msra.mxu0 %v2908_v51  ;;  %v645_v51 = vadd.f32 %v644_v47, %v643_v43 }
  0x28   :  { %2521 = vmatprep.subr.bf16.mxu0 %v2909_v52  ;;  %v3242_v52 = vmul.f32 0.083333336, %v636_v49 }
  0x29   :  { %2637 = vmatpush3.bf16.msra.mxu1 %v2923_v27 }
  0x2a   :  { %2638 = vmatprep.subr.bf16.mxu1 %v3021_v23 }
  0x2b   :  { %2522 = vmatpush3.bf16.msra.mxu0 %v2910_v53  ;;  %v611_v53 = vsel %vm610_vm2, %v607_v50, %v606_v48 }
  0x2c   :  { %2523 = vmatprep.subr.bf16.mxu0 %v2911_v54  ;;  %v647_v54 = vmul.f32 0.083333336, %v645_v51 }
  0x2d   :  { %2639 = vmatpush3.bf16.msra.mxu1 %v2925_v32  ;;  %v2937_v32 = vld [vmem:[%s3681_s3 + $0x338] sm:$0xff]  }
  0x2e   :  { %v649_v57 = vmul.f32 %v647_v54, %v647_v54  ;;  %2640 = vmatprep.subr.bf16.mxu1 %v3021_v23 }
  0x2f   :  { %2524 = vmatpush3.bf16.msra.mxu0 %v2912_v55  ;;  %v613_v55 = vsel %vm572_vm3, %v611_v53, 0.0 }
  0x30   :  { %2525 = vmatprep.subr.bf16.mxu0 %v2913_v56  ;;  %v648_v56 = vmul.f32 %v3242_v52, %v3242_v52  ;;  %614 = vadd.xlane.f32.xlu0 %v613_v55 }
  0x31   :  { %2641 = vmatpush3.bf16.msra.mxu1 %v2927_v37 }
  0x32   :  { %v652_v58 = vsel %vm610_vm2, %v649_v57, %v648_v56  ;;  %2646 = vmatprep.subr.bf16.mxu1 %v3021_v23  ;;  %v2930_v56 = vld [vmem:[%s3681_s3 + $0x1a8] sm:$0xff]   ;;  %v2931_v57 = vld [vmem:[%s3681_s3 + $0x1b0] sm:$0xff]  }
  0x33   :  { %2526 = vmatpush3.bf16.msra.mxu0 %v2914_v59  ;;  %v654_v59 = vsel %vm572_vm3, %v652_v58, 0.0  ;;  %v2932_v58 = vld [vmem:[%s3681_s3 + $0x1b8] sm:$0xff]  }
  0x34   :  { %2527 = vmatprep.subr.bf16.mxu0 %v2915_v60  ;;  %655 = vadd.xlane.f32.xlu0 %v654_v59  ;;  %v2933_v59 = vld [vmem:[%s3681_s3 + $0x318] sm:$0xff]  }
  0x37   :  { %2528 = vmatpush3.bf16.msra.mxu0 %v2916_v62 }
  0x38   :  { %2529 = vmatprep.subr.bf16.mxu0 %v2917_v63 }
  0x3b   :  { %2530 = vmatpush3.bf16.msra.mxu0 %v2918_v0 }
  0x3c   :  { %2531 = vmatprep.subr.bf16.mxu0 %v2919_v1 }
  0x3f   :  { %2532 = vmatpush3.bf16.msra.mxu0 %v2920_v2 }
  0x40   :  { %2658 = vmatprep.subr.bf16.mxu0 %v3021_v23 }
  0x42   :  { %564 = vmatmul.mubr.bf16.vlgmr.msra.gmra.mrb[4].mxu0 %v156_v3 }
  0x43   :  { %2659 = vmatpush3.bf16.msra.mxu0 %v2922_v24  ;;  %2666 = vmatprep.mubr.msk.bf16.mxu0 %vm3022_vm4, %v3021_v23 }
  0x44   :  { %2660 = vmatprep.subr.bf16.mxu0 %v3021_v23 }
  0x47   :  { %2661 = vmatpush3.bf16.msra.mxu0 %v2924_v28 }
  0x48   :  { %2662 = vmatprep.subr.bf16.mxu0 %v3021_v23 }
  0x4b   :  { %2663 = vmatpush3.bf16.msra.mxu0 %v2926_v33  ;;  %v2938_v33 = vld [vmem:[%s3681_s3 + $0x340] sm:$0xff]  }
  0x4c   :  { %2664 = vmatprep.subr.bf16.mxu0 %v3021_v23 }
  0x4f   :  { %2665 = vmatpush3.bf16.msra.mxu0 %v2928_v38 }
  0x50   :  { %2682 = vmatprep.subr.bf16.mxu0 %v3021_v23 }
  0xbd   :  { %v615_v17 = vpop.xlane.xlu0 %614 }
  0xbe   :  { %v616_v18 = vmax.f32 %v615_v17, 1e-24 }
  0xc0   :  { %2980 = vrsqrt.f32 %v616_v18 }
  0xc1   :  { %v656_v19 = vpop.xlane.xlu0 %655 }
  0xc2   :  { %v657_v20 = vmax.f32 %v656_v19, 1e-24 }
  0xc4   :  { %2982 = vrsqrt.f32 %v657_v20 }
  0xca   :  { %v2981_v21 = vpop.eup %2980 }
  0xcb   :  { %v619_v25 = vrot.slane %v2981_v21, 1  ;;  %v622_v31 = vmul.f32 %v2981_v21, %v3238_v44 }
  0xcd   :  { %v623_v29 = vmul.f32 %v619_v25, %v605_v46  ;;  %v667_v44 = vrot.slane %v622_v31, 6 }
  0xce   :  { %v2983_v26 = vpop.eup %2982 }
  0xcf   :  { %v660_v30 = vrot.slane %v2983_v26, 1  ;;  %v2301_v35 = vrot.slane %v623_v29, 7  ;;  %v663_v36 = vmul.f32 %v2983_v26, %v3242_v52  ;;  %v668_v45 = vrot.slane %v623_v29, 5 }
  0xd1   :  { %v664_v34 = vmul.f32 %v660_v30, %v647_v54  ;;  %v3293_v39 = vsel %vm610_vm2, %v2301_v35, %v622_v31  ;;  %v674_v46 = vrot.slane %v663_v36, 4  ;;  %v670_v50 = vsel %vm669_vm5, %v668_v45, %v667_v44  ;;  %v2929_v54 = vld [vmem:[%s3681_s3 + $0x1a0] sm:$0xff]   ;;  %v2940_v35 = vld [vmem:[%s3681_s3 + $0x350] sm:$0xff]  }
  0xd3   :  { %v2304_v40 = vrot.slane %v664_v34, 7  ;;  %v675_v47 = vrot.slane %v664_v34, 3  ;;  %v2939_v34 = vld [vmem:[%s3681_s3 + $0x348] sm:$0xff]  }
  0xd5   :  { %v3302_v41 = vsel %vm610_vm2, %v2304_v40, %v663_v36  ;;  %v677_v51 = vsel %vm676_vm6, %v675_v47, %v674_v46 }
  0xf5   :  { %v2489_v60 = vpop.f32.mrb[0].mxu0 }
  0xf6   :  { %v2490_v62 = vpop.f32.mrb[1].mxu0 }
  0xf7   :  { %v2491_v63 = vadd.f32 %v2490_v62, %v2489_v60  ;;  %v2492_v0 = vpop.f32.mrb[2].mxu0  ;;  %v2511_v1 = vpop.f32.mrb[0].mxu1  ;;  %v2934_v60 = vld [vmem:[%s3681_s3 + $0x320] sm:$0xff]   ;;  %v2936_v62 = vld [vmem:[%s3681_s3 + $0x330] sm:$0xff]  }
  0xf8   :  { %v2493_v2 = vpop.f32.mrb[3].mxu0  ;;  %v2512_v3 = vpop.f32.mrb[1].mxu1 }
  0xf9   :  { %v486_v4 = vadd.f32 %v2491_v63, %v2327_v61  ;;  %v2513_v5 = vadd.f32 %v2512_v3, %v2511_v1  ;;  %v2514_v6 = vpop.f32.mrb[2].mxu1  ;;  %v2935_v61 = vld [vmem:[%s3681_s3 + $0x328] sm:$0xff]  }
  0xfa   :  { %v2515_v7 = vpop.f32.mrb[3].mxu1 }
  0xfb   :  { %v526_v8 = vadd.f32 %v2513_v5, %v486_v4  ;;  %v2376_v7 = vld [vmem:[%s3685_s4 + $0x1] ss:$0 sm:$0xff] }
 0x115   :  { %v2533_v9 = vpop.f32.mrb[4].mxu0 }
 0x116   :  { %v2534_v10 = vpop.f32.mrb[5].mxu0 }
 0x117   :  { %v2535_v11 = vadd.f32 %v2534_v10, %v2533_v9  ;;  %v2536_v12 = vpop.f32.mrb[6].mxu0 }
 0x118   :  { %v2537_v13 = vpop.f32.mrb[7].mxu0 }
 0x119   :  { %v3253_v14 = vadd.f32 %v2535_v11, %v526_v8  ;;  %v2382_v8 = vld [vmem:[%s3685_s4 + $0x2] ss:$0 sm:$0xff] }
 0x11b   :  { %v571_v15 = vmul.f32 %v3253_v14, %v3253_v14 }
 0x11d   :  { %v573_v16 = vsel %vm572_vm3, %v571_v15, 0.0 }
 0x11e   :  { %574 = vadd.xlane.f32.xlu1 %v573_v16 }
 0x1ab   :  { %v575_v42 = vpop.xlane.xlu1 %574 }
 0x1ac   :  { %v576_v43 = vmax.f32 %v575_v42, 1e-24 }
 0x1ae   :  { %2984 = vrsqrt.f32 %v576_v43 }
 0x1b8   :  { %v2985_v48 = vpop.eup %2984 }
 0x1b9   :  { %v3305_v49 = vmul.f32 %v2985_v48, %v3253_v14 }
 0x1bb   :  { %v680_v52 = vsel %vm679_vm7, %v3305_v49, %v670_v50 }
 0x1bc   :  { %v682_v53 = vsel %vm681_vm8, %v680_v52, %v677_v51 }
 0x1bd   :  { %v683_v55 = vpack.c.bf16 %v682_v53, %v682_v53 }
 0x1bf   :  { %2643 = vmatmul.mubr.msk.bf16.vlgmr.msra.gmra.mrb[4].mxu1 %vm583_vm0, %v683_v55  ;;  %2667 = vmatmul.mubr.msk.bf16.vlgmr.msra.gmra.mrb[8].mxu0 %vm583_vm0, %v683_v55 }
 0x1c0   :  { %2647 = vmatpush3.bf16.msra.mxu1 %v2929_v54  ;;  %2654 = vmatprep.mubr.msk.bf16.mxu1 %vm3022_vm4, %v3021_v23 }
 0x1c1   :  { %2648 = vmatprep.subr.bf16.mxu1 %v3021_v23  ;;  %2690 = vmatprep.mubr.msk.bf16.mxu0 %vm3022_vm4, %v3021_v23 }
 0x1c2   :  { %2683 = vmatpush3.bf16.msra.mxu0 %v2933_v59 }
 0x1c3   :  { %2684 = vmatprep.subr.bf16.mxu0 %v3021_v23 }
 0x1c4   :  { %2649 = vmatpush3.bf16.msra.mxu1 %v2930_v56 }
 0x1c5   :  { %2650 = vmatprep.subr.bf16.mxu1 %v3021_v23 }
 0x1c6   :  { %2685 = vmatpush3.bf16.msra.mxu0 %v2934_v60 }
 0x1c7   :  { %2686 = vmatprep.subr.bf16.mxu0 %v3021_v23 }
 0x1c8   :  { %2651 = vmatpush3.bf16.msra.mxu1 %v2931_v57 }
 0x1c9   :  { %2652 = vmatprep.subr.bf16.mxu1 %v3021_v23 }
 0x1ca   :  { %2687 = vmatpush3.bf16.msra.mxu0 %v2935_v61 }
 0x1cb   :  { %2688 = vmatprep.subr.bf16.mxu0 %v3021_v23 }
 0x1cc   :  { %2653 = vmatpush3.bf16.msra.mxu1 %v2932_v58 }
 0x1cd   :  { %2670 = vmatprep.subr.bf16.mxu1 %v3021_v23 }
 0x1ce   :  { %2689 = vmatpush3.bf16.msra.mxu0 %v2936_v62 }
 0x1cf   :  { %2655 = vmatmul.mubr.msk.bf16.vlgmr.msra.gmra.mrb[8].mxu1 %vm583_vm0, %v683_v55  ;;  %2706 = vmatprep.subr.bf16.mxu0 %v3021_v23 }
 0x1d0   :  { %2678 = vmatprep.mubr.msk.bf16.mxu1 %vm3022_vm4, %v3021_v23  ;;  %2671 = vmatpush3.bf16.msra.mxu1 %v2933_v59 }
 0x1d1   :  { %2672 = vmatprep.subr.bf16.mxu1 %v3021_v23 }
 0x1d4   :  { %2673 = vmatpush3.bf16.msra.mxu1 %v2934_v60 }
 0x1d5   :  { %2674 = vmatprep.subr.bf16.mxu1 %v3021_v23 }
 0x1d8   :  { %2675 = vmatpush3.bf16.msra.mxu1 %v2935_v61 }
 0x1d9   :  { %2676 = vmatprep.subr.bf16.mxu1 %v3021_v23 }
 0x1dc   :  { %2677 = vmatpush3.bf16.msra.mxu1 %v2936_v62 }
 0x1dd   :  { %2694 = vmatprep.subr.bf16.mxu1 %v3021_v23 }
 0x292   :  { %v758_v63 = vpop.f32.mrb[4].mxu1  ;;  %v3355_v0 = vpop.f32.mrb[8].mxu0 }
 0x293   :  { %v2644_v1 = vpop.f32.mrb[5].mxu1  ;;  %v2668_v2 = vpop.f32.mrb[9].mxu0  ;;  %v759_v10 = vadd.f32 %v2376_v7, %v758_v63 }
 0x294   :  { %v761_v3 = vpop.f32.mrb[6].mxu1  ;;  %v916_v4 = vpop.f32.mrb[10].mxu0 }
 0x295   :  { %v2645_v5 = vpop.f32.mrb[7].mxu1  ;;  %v2669_v6 = vpop.f32.mrb[11].mxu0  ;;  %v764_v18 = vmul.f32 0.35355338, %v759_v10  ;;  %v2943_v10 = vld [vmem:[%s3681_s3 + $0x1f0] sm:$0xff]  }
 0x2a2   :  { %v836_v9 = vpop.f32.mrb[8].mxu1 }
 0x2a3   :  { %v837_v11 = vadd.f32 %v2382_v8, %v836_v9  ;;  %v2656_v12 = vpop.f32.mrb[9].mxu1  ;;  %v2941_v8 = vld [vmem:[%s3681_s3 + $0x1e0] sm:$0xff]   ;;  %v2942_v9 = vld [vmem:[%s3681_s3 + $0x1e8] sm:$0xff]  }
 0x2a4   :  { %v839_v13 = vpop.f32.mrb[10].mxu1  ;;  %v2946_v12 = vld [vmem:[%s3681_s3 + $0x220] sm:$0xff]  }
 0x2a5   :  { %v936_v14 = vrot.slane %v837_v11, 6  ;;  %v942_v15 = vrot.slane %v837_v11, 2  ;;  %v2657_v16 = vpop.f32.mrb[11].mxu1  ;;  %v938_v17 = vrot.slane %v837_v11, 4  ;;  %v2948_v13 = vld [vmem:[%s3681_s3 + $0x228] sm:$0xff]  }
 0x2a7   :  { %v940_v19 = vsel %vm679_vm7, %v837_v11, %v936_v14  ;;  %v944_v20 = vsel %vm679_vm7, %v942_v15, %v837_v11  ;;  %v946_v21 = vsel %vm679_vm7, %v938_v17, %v942_v15  ;;  %v2388_v15 = vld [vmem:[%s3685_s4 + $0x3] ss:$0 sm:$0xff] }
 0x2a8   :  { %v941_v22 = vsel %vm681_vm8, %v940_v19, %v938_v17  ;;  %v945_v24 = vsel %vm681_vm8, %v944_v20, %v936_v14  ;;  %v947_v25 = vsel %vm681_vm8, %v946_v21, %v837_v11  ;;  %v2944_v11 = vld [vmem:[%s3681_s3 + $0x1f8] sm:$0xff]   ;;  %v2950_v14 = vld [vmem:[%s3681_s3 + $0x230] sm:$0xff]   ;;  %v914_v16 = vadd.f32 %v2388_v15, %v3355_v0 }
 0x2a9   :  { %v961_v26 = vmul.f32 %v941_v22, %v764_v18  ;;  %v1030_v27 = vmul.f32 %v945_v24, %v764_v18  ;;  %v1075_v28 = vmul.f32 %v947_v25, %v764_v18 }
 0x2aa   :  { %v949_v17 = vrot.slane %v914_v16, 6  ;;  %v955_v18 = vrot.slane %v914_v16, 2  ;;  %v951_v19 = vrot.slane %v914_v16, 4 }
 0x2ab   :  { %v962_v29 = vpack.c.bf16 %v961_v26, %v961_v26  ;;  %v1031_v30 = vpack.c.bf16 %v1030_v27, %v1030_v27  ;;  %v1076_v31 = vpack.c.bf16 %v1075_v28, %v1075_v28 }
 0x2ac   :  { %v953_v20 = vsel %vm679_vm7, %v914_v16, %v949_v17  ;;  %v957_v21 = vsel %vm679_vm7, %v955_v18, %v914_v16 }
 0x2ad   :  { %2679 = vmatmul.mubr.msk.bf16.vlgmr.msra.gmra.mrb[12].mxu1 %vm583_vm0, %v962_v29  ;;  %2691 = vmatmul.mubr.msk.bf16.vlgmr.msra.gmra.mrb[12].mxu0 %vm583_vm0, %v1031_v30  ;;  %v954_v22 = vsel %vm681_vm8, %v953_v20, %v951_v19  ;;  %v958_v25 = vsel %vm681_vm8, %v957_v21, %v949_v17  ;;  %v2429_v17 = vld [vmem:[%s3685_s4 + $0x5] ss:$0 sm:$0xff] }
 0x2ae   :  { %2695 = vmatpush3.bf16.msra.mxu1 %v2933_v59  ;;  %2702 = vmatprep.mubr.msk.bf16.mxu1 %vm3022_vm4, %v3021_v23 }
 0x2af   :  { %2696 = vmatprep.subr.bf16.mxu1 %v3021_v23  ;;  %2714 = vmatprep.mubr.msk.bf16.mxu0 %vm3022_vm4, %v3021_v23 }
 0x2b0   :  { %2707 = vmatpush3.bf16.msra.mxu0 %v2937_v32 }
 0x2b1   :  { %2708 = vmatprep.subr.bf16.mxu0 %v3021_v23 }
 0x2b2   :  { %2697 = vmatpush3.bf16.msra.mxu1 %v2934_v60 }
 0x2b3   :  { %2698 = vmatprep.subr.bf16.mxu1 %v3021_v23 }
 0x2b4   :  { %2709 = vmatpush3.bf16.msra.mxu0 %v2938_v33 }
 0x2b5   :  { %2710 = vmatprep.subr.bf16.mxu0 %v3021_v23 }
 0x2b6   :  { %2699 = vmatpush3.bf16.msra.mxu1 %v2935_v61 }
 0x2b7   :  { %2700 = vmatprep.subr.bf16.mxu1 %v3021_v23 }
 0x2b8   :  { %2711 = vmatpush3.bf16.msra.mxu0 %v2939_v34 }
 0x2b9   :  { %2712 = vmatprep.subr.bf16.mxu0 %v3021_v23 }
 0x2ba   :  { %2701 = vmatpush3.bf16.msra.mxu1 %v2936_v62 }
 0x2bb   :  { %2718 = vmatprep.subr.bf16.mxu1 %v3021_v23 }
 0x2bc   :  { %2713 = vmatpush3.bf16.msra.mxu0 %v2940_v35 }
 0x2bd   :  { %2703 = vmatmul.mubr.msk.bf16.vlgmr.msra.gmra.mrb[16].mxu1 %vm583_vm0, %v1076_v31  ;;  %2730 = vmatprep.subr.bf16.mxu0 %v3021_v23 }
 0x2be   :  { %2726 = vmatprep.mubr.msk.bf16.mxu1 %vm3022_vm4, %v3021_v23  ;;  %2719 = vmatpush3.bf16.msra.mxu1 %v2937_v32 }
 0x2bf   :  { %2720 = vmatprep.subr.bf16.mxu1 %v3021_v23 }
 0x2c2   :  { %2721 = vmatpush3.bf16.msra.mxu1 %v2938_v33 }
 0x2c3   :  { %2722 = vmatprep.subr.bf16.mxu1 %v3021_v23 }
 0x2c6   :  { %2723 = vmatpush3.bf16.msra.mxu1 %v2939_v34 }
 0x2c7   :  { %2724 = vmatprep.subr.bf16.mxu1 %v3021_v23 }
 0x2ca   :  { %2725 = vmatpush3.bf16.msra.mxu1 %v2940_v35 }
 0x2cb   :  { %2742 = vmatprep.subr.bf16.mxu1 %v3021_v23 }
 0x380   :  { %v1024_v36 = vpop.f32.mrb[12].mxu1  ;;  %v1069_v37 = vpop.f32.mrb[12].mxu0 }
 0x381   :  { %v1120_v38 = vmax.f32 %v1024_v36, %v1069_v37  ;;  %v2680_v40 = vpop.f32.mrb[13].mxu1  ;;  %v2692_v42 = vpop.f32.mrb[13].mxu0 }
 0x382   :  { %v1027_v43 = vpop.f32.mrb[14].mxu1  ;;  %v1072_v44 = vpop.f32.mrb[14].mxu0 }
 0x383   :  { %v2681_v45 = vpop.f32.mrb[15].mxu1  ;;  %v2693_v46 = vpop.f32.mrb[15].mxu0 }
 0x384   :  { %v2945_v45 = vld [vmem:[%s3681_s3 + $0x200] sm:$0xff]  }
 0x390   :  { %v1114_v47 = vpop.f32.mrb[16].mxu1 }
 0x391   :  { %v1121_v48 = vmax.f32 %v1120_v38, %v1114_v47  ;;  %v2704_v50 = vpop.f32.mrb[17].mxu1 }
 0x392   :  { %v1117_v51 = vpop.f32.mrb[18].mxu1  ;;  %v2951_v50 = vld [vmem:[%s3681_s3 + $0x218] sm:$0xff]  }
 0x393   :  { %v1122_v52 = vsub.f32 %v1024_v36, %v1121_v48  ;;  %v1125_v53 = vsub.f32 %v1069_v37, %v1121_v48  ;;  %v1128_v54 = vsub.f32 %v1114_v47, %v1121_v48  ;;  %v2705_v55 = vpop.f32.mrb[19].mxu1  ;;  %v2947_v47 = vld [vmem:[%s3681_s3 + $0x208] sm:$0xff]   ;;  %v2949_v48 = vld [vmem:[%s3681_s3 + $0x210] sm:$0xff]   ;;  %v2952_v51 = vld [vmem:[%s3681_s3 + $0x238] sm:$0xff]  }
 0x395   :  { %v1123_v56 = vmul.f32 1.442695, %v1122_v52  ;;  %v1126_v57 = vmul.f32 1.442695, %v1125_v53  ;;  %v1129_v58 = vmul.f32 1.442695, %v1128_v54 }
 0x396   :  { %v2408_v52 = vld [vmem:[%s3685_s4 + $0x4] ss:$0 sm:$0xff] }
 0x397   :  { %2986 = vpow2.f32 %v1123_v56 }
 0x398   :  { %2988 = vpow2.f32 %v1126_v57 }
 0x399   :  { %2990 = vpow2.f32 %v1129_v58 }
 0x3a1   :  { %v2987_v59 = vpop.eup %2986 }
 0x3a2   :  { %v2989_v60 = vpop.eup %2988 }
 0x3a3   :  { %v1131_v61 = vadd.f32 %v2989_v60, %v2987_v59  ;;  %v2991_v62 = vpop.eup %2990 }
 0x3a5   :  { %v1132_v63 = vadd.f32 %v2991_v62, %v1131_v61  ;;  %v2954_v61 = vld [vmem:[%s3681_s3 + $0x248] sm:$0xff]  }
 0x3a7   :  { %2992 = vrcp.f32 %v1132_v63  ;;  %v2956_v63 = vld [vmem:[%s3681_s3 + $0x258] sm:$0xff]  }
 0x3b1   :  { %v2993_v1 = vpop.eup %2992 }
 0x3b2   :  { %v1134_v2 = vmul.f32 %v2993_v1, %v2987_v59  ;;  %v1204_v3 = vmul.f32 %v2993_v1, %v2989_v60  ;;  %v1251_v4 = vmul.f32 %v2993_v1, %v2991_v62  ;;  %v2953_v59 = vld [vmem:[%s3681_s3 + $0x240] sm:$0xff]   ;;  %v2955_v62 = vld [vmem:[%s3681_s3 + $0x250] sm:$0xff]  }
 0x3b3   :  { %v2957_v1 = vld [vmem:[%s3681_s3 + $0x280] sm:$0xff]  }
 0x3b4   :  { %v1135_v5 = vpack.c.bf16 %v1134_v2, %v1134_v2  ;;  %v1205_v6 = vpack.c.bf16 %v1204_v3, %v1204_v3  ;;  %v1252_v7 = vpack.c.bf16 %v1251_v4, %v1251_v4  ;;  %v2958_v3 = vld [vmem:[%s3681_s3 + $0x288] sm:$0xff]   ;;  %v2959_v4 = vld [vmem:[%s3681_s3 + $0x290] sm:$0xff]  }
 0x3b6   :  { %2715 = vmatmul.mubr.msk.bf16.vlgmr.msra.gmra.mrb[16].mxu0 %vm583_vm0, %v1135_v5  ;;  %2727 = vmatmul.mubr.msk.bf16.vlgmr.msra.gmra.mrb[20].mxu1 %vm583_vm0, %v1205_v6  ;;  %v2960_v5 = vld [vmem:[%s3681_s3 + $0x298] sm:$0xff]   ;;  %v1757_v6 = vpack.c.bf16 %v3305_v49, %v3305_v49 }
 0x3b7   :  { %2731 = vmatpush3.bf16.msra.mxu0 %v2937_v32  ;;  %2738 = vmatprep.mubr.msk.bf16.mxu0 %vm3022_vm4, %v3021_v23 }
 0x3b8   :  { %2732 = vmatprep.subr.bf16.mxu0 %v3021_v23  ;;  %2750 = vmatprep.mubr.msk.bf16.mxu1 %vm3022_vm4, %v3021_v23 }
 0x3b9   :  { %2743 = vmatpush3.bf16.msra.mxu1 %v2941_v8 }
 0x3ba   :  { %2744 = vmatprep.subr.bf16.mxu1 %v3021_v23 }
 0x3bb   :  { %2733 = vmatpush3.bf16.msra.mxu0 %v2938_v33 }
 0x3bc   :  { %2734 = vmatprep.subr.bf16.mxu0 %v3021_v23 }
 0x3bd   :  { %2745 = vmatpush3.bf16.msra.mxu1 %v2942_v9 }
 0x3be   :  { %2746 = vmatprep.subr.bf16.mxu1 %v3021_v23 }
 0x3bf   :  { %2735 = vmatpush3.bf16.msra.mxu0 %v2939_v34 }
 0x3c0   :  { %2736 = vmatprep.subr.bf16.mxu0 %v3021_v23 }
 0x3c1   :  { %2747 = vmatpush3.bf16.msra.mxu1 %v2943_v10 }
 0x3c2   :  { %2748 = vmatprep.subr.bf16.mxu1 %v3021_v23 }
 0x3c3   :  { %2737 = vmatpush3.bf16.msra.mxu0 %v2940_v35  ;;  %v959_v35 = vsel %vm679_vm7, %v951_v19, %v955_v18 }
 0x3c4   :  { %2754 = vmatprep.subr.bf16.mxu0 %v3021_v23  ;;  %v960_v36 = vsel %vm681_vm8, %v959_v35, %v914_v16  ;;  %v2963_v35 = vld [vmem:[%s3681_s3 + $0x270] sm:$0xff]  }
 0x3c5   :  { %2749 = vmatpush3.bf16.msra.mxu1 %v2944_v11 }
 0x3c6   :  { %2739 = vmatmul.mubr.msk.bf16.vlgmr.msra.gmra.mrb[20].mxu0 %vm583_vm0, %v1252_v7  ;;  %2766 = vmatprep.subr.bf16.mxu1 %v3021_v23 }
 0x3c7   :  { %2762 = vmatprep.mubr.msk.bf16.mxu0 %vm3022_vm4, %v3021_v23  ;;  %2755 = vmatpush3.bf16.msra.mxu0 %v2946_v12 }
 0x3c8   :  { %2756 = vmatprep.subr.bf16.mxu0 %v3021_v23 }
 0x3cb   :  { %2757 = vmatpush3.bf16.msra.mxu0 %v2948_v13 }
 0x3cc   :  { %2758 = vmatprep.subr.bf16.mxu0 %v3021_v23 }
 0x3cf   :  { %2759 = vmatpush3.bf16.msra.mxu0 %v2950_v14 }
 0x3d0   :  { %2760 = vmatprep.subr.bf16.mxu0 %v3021_v23 }
 0x3d3   :  { %2761 = vmatpush3.bf16.msra.mxu0 %v2952_v51 }
 0x3d4   :  { %2778 = vmatprep.subr.bf16.mxu0 %v3021_v23 }
 0x489   :  { %v1197_v24 = vpop.f32.mrb[16].mxu0  ;;  %v1243_v26 = vpop.f32.mrb[20].mxu1 }
 0x48a   :  { %v1203_v27 = vmul.f32 %v1197_v24, %v954_v22  ;;  %v1249_v28 = vmul.f32 %v1243_v26, %v958_v25  ;;  %v2716_v29 = vpop.f32.mrb[17].mxu0  ;;  %v2728_v30 = vpop.f32.mrb[21].mxu1 }
 0x48b   :  { %v1200_v31 = vpop.f32.mrb[18].mxu0  ;;  %v1246_v32 = vpop.f32.mrb[22].mxu1 }
 0x48c   :  { %v1250_v0 = vadd.f32 %v1249_v28, %v1203_v27  ;;  %v2717_v33 = vpop.f32.mrb[19].mxu0  ;;  %v2729_v34 = vpop.f32.mrb[23].mxu1 }
 0x48d   :  { %v2961_v33 = vld [vmem:[%s3681_s3 + $0x260] sm:$0xff]   ;;  %v2962_v34 = vld [vmem:[%s3681_s3 + $0x268] sm:$0xff]  }
 0x499   :  { %v1290_v37 = vpop.f32.mrb[20].mxu0 }
 0x49a   :  { %v1296_v38 = vmul.f32 %v1290_v37, %v960_v36  ;;  %v2740_v40 = vpop.f32.mrb[21].mxu0  ;;  %v2964_v36 = vld [vmem:[%s3681_s3 + $0x278] sm:$0xff]  }
 0x49b   :  { %v1293_v42 = vpop.f32.mrb[22].mxu0 }
 0x49c   :  { %v1297_v43 = vadd.f32 %v1296_v38, %v1250_v0  ;;  %v2741_v44 = vpop.f32.mrb[23].mxu0 }
 0x49e   :  { %v1306_v46 = vpack.c.bf16 %v1297_v43, %v1297_v43  ;;  %v2430_v43 = vld [vmem:[%s3685_s4 + $0x6] ss:$0 sm:$0xff] }
 0x4a0   :  { %2751 = vmatmul.mubr.msk.bf16.vlgmr.msra.gmra.mrb[24].mxu1 %vm583_vm0, %v1306_v46 }
 0x4a1   :  { %2767 = vmatpush3.bf16.msra.mxu1 %v2945_v45  ;;  %2774 = vmatprep.mubr.msk.bf16.mxu1 %vm3022_vm4, %v3021_v23  ;;  %v2431_v45 = vld [vmem:[%s3685_s4 + $0x7] ss:$0 sm:$0xff] }
 0x4a2   :  { %2768 = vmatprep.subr.bf16.mxu1 %v3021_v23 }
 0x4a5   :  { %2769 = vmatpush3.bf16.msra.mxu1 %v2947_v47 }
 0x4a6   :  { %2770 = vmatprep.subr.bf16.mxu1 %v3021_v23 }
 0x4a9   :  { %2771 = vmatpush3.bf16.msra.mxu1 %v2949_v48 }
 0x4aa   :  { %2772 = vmatprep.subr.bf16.mxu1 %v3021_v23 }
 0x4ad   :  { %2773 = vmatpush3.bf16.msra.mxu1 %v2951_v50 }
 0x4ae   :  { %2790 = vmatprep.subr.bf16.mxu1 %v3021_v23 }
 0x573   :  { %v1373_v53 = vpop.f32.mrb[24].mxu1 }
 0x574   :  { %v1374_v54 = vadd.f32 %v2408_v52, %v1373_v53  ;;  %v2752_v55 = vpop.f32.mrb[25].mxu1 }
 0x575   :  { %v1376_v56 = vpop.f32.mrb[26].mxu1 }
 0x576   :  { %v1379_v57 = vpack.c.bf16 %v1374_v54, %v1374_v54  ;;  %v2753_v58 = vpop.f32.mrb[27].mxu1 }
 0x578   :  { %v1397_v60 = vrot.slane %v1379_v57, 1  ;;  %2775 = vmatmul.mubr.msk.bf16.vlgmr.msra.gmra.mrb[28].mxu1 %vm583_vm0, %v1379_v57  ;;  %v1540_v2 = vrot.slane %v1379_v57, 2 }
 0x579   :  { %2798 = vmatprep.mubr.msk.bf16.mxu1 %vm3022_vm4, %v3021_v23  ;;  %2791 = vmatpush3.bf16.msra.mxu1 %v2961_v33 }
 0x57a   :  { %2763 = vmatmul.mubr.msk.bf16.vlgmr.msra.gmra.mrb[24].mxu0 %vm583_vm0, %v1397_v60  ;;  %2792 = vmatprep.subr.bf16.mxu1 %v3021_v23 }
 0x57b   :  { %2779 = vmatpush3.bf16.msra.mxu0 %v2953_v59  ;;  %2786 = vmatprep.mubr.msk.bf16.mxu0 %vm3022_vm4, %v3021_v23 }
 0x57c   :  { %2780 = vmatprep.subr.bf16.mxu0 %v3021_v23 }
 0x57d   :  { %2793 = vmatpush3.bf16.msra.mxu1 %v2962_v34  ;;  %v2444_v34 = vld [vmem:[%s3685_s4 + $0xa] ss:$0 sm:$0xff] }
 0x57e   :  { %2794 = vmatprep.subr.bf16.mxu1 %v3021_v23 }
 0x57f   :  { %2781 = vmatpush3.bf16.msra.mxu0 %v2954_v61 }
 0x580   :  { %2782 = vmatprep.subr.bf16.mxu0 %v3021_v23 }
 0x581   :  { %2795 = vmatpush3.bf16.msra.mxu1 %v2963_v35 }
 0x582   :  { %2796 = vmatprep.subr.bf16.mxu1 %v3021_v23 }
 0x583   :  { %2783 = vmatpush3.bf16.msra.mxu0 %v2955_v62 }
 0x584   :  { %2784 = vmatprep.subr.bf16.mxu0 %v3021_v23 }
 0x585   :  { %2797 = vmatpush3.bf16.msra.mxu1 %v2964_v36 }
 0x586   :  { %2814 = vmatprep.subr.bf16.mxu1 %v3021_v23 }
 0x587   :  { %2785 = vmatpush3.bf16.msra.mxu0 %v2956_v63 }
 0x588   :  { %2802 = vmatprep.subr.bf16.mxu0 %v3021_v23 }
 0x58a   :  { %2787 = vmatmul.mubr.msk.bf16.vlgmr.msra.gmra.mrb[28].mxu0 %vm583_vm0, %v1540_v2 }
 0x58b   :  { %2803 = vmatpush3.bf16.msra.mxu0 %v2957_v1  ;;  %2810 = vmatprep.mubr.msk.bf16.mxu0 %vm3022_vm4, %v3021_v23 }
 0x58c   :  { %2804 = vmatprep.subr.bf16.mxu0 %v3021_v23 }
 0x58f   :  { %2805 = vmatpush3.bf16.msra.mxu0 %v2958_v3 }
 0x590   :  { %2806 = vmatprep.subr.bf16.mxu0 %v3021_v23 }
 0x593   :  { %2807 = vmatpush3.bf16.msra.mxu0 %v2959_v4 }
 0x594   :  { %2808 = vmatprep.subr.bf16.mxu0 %v3021_v23 }
 0x597   :  { %2809 = vmatpush3.bf16.msra.mxu0 %v2960_v5 }
 0x598   :  { %2826 = vmatprep.subr.bf16.mxu0 %v3021_v23 }
 0x59a   :  { %2811 = vmatmul.mubr.msk.bf16.vlgmr.msra.gmra.mrb[32].mxu0 %vm583_vm0, %v1757_v6 }
 0x59b   :  { %2830 = vmatprep.mubr.msk.bf16.mxu0 %vm3022_vm4, %v3021_v23 }
 0x64b   :  { %v1526_v7 = vpop.f32.mrb[28].mxu1 }
 0x64c   :  { %v2776_v8 = vpop.f32.mrb[29].mxu1 }
 0x64d   :  { %v1459_v9 = vpop.f32.mrb[24].mxu0  ;;  %v1529_v10 = vpop.f32.mrb[30].mxu1 }
 0x64e   :  { %v1527_v11 = vadd.f32 %v1526_v7, %v1459_v9  ;;  %v2764_v12 = vpop.f32.mrb[25].mxu0  ;;  %v2777_v13 = vpop.f32.mrb[31].mxu1 }
 0x64f   :  { %v1462_v14 = vpop.f32.mrb[26].mxu0  ;;  %v2966_v13 = vld [vmem:[%s3681_s3 + $0x2a8] sm:$0xff]  }
 0x650   :  { %v2765_v15 = vpop.f32.mrb[27].mxu0  ;;  %v2967_v14 = vld [vmem:[%s3681_s3 + $0x2b0] sm:$0xff]  }
 0x651   :  { %v2968_v15 = vld [vmem:[%s3681_s3 + $0x2b8] sm:$0xff]  }
 0x65d   :  { %v1602_v16 = vpop.f32.mrb[28].mxu0 }
 0x65e   :  { %v1608_v18 = vadd.f32 %v1602_v16, %v1527_v11  ;;  %v2788_v19 = vpop.f32.mrb[29].mxu0  ;;  %v2965_v11 = vld [vmem:[%s3681_s3 + $0x2a0] sm:$0xff]   ;;  %v2438_v16 = vld [vmem:[%s3685_s4 + $0x9] ss:$0 sm:$0xff] }
 0x65f   :  { %v1605_v20 = vpop.f32.mrb[30].mxu0 }
 0x660   :  { %v2789_v21 = vpop.f32.mrb[31].mxu0  ;;  %v1614_v22 = vadd.f32 %v2429_v17, %v1608_v18 }
 0x662   :  { %v1617_v24 = vsel %vm572_vm3, %v1614_v22, 0.0 }
 0x663   :  { %1618 = vadd.xlane.f32.xlu1 %v1617_v24  ;;  %v2432_v24 = vld [vmem:[%s3685_s4 + $0x8] ss:$0 sm:$0xff] }
 0x66d   :  { %v3529_v25 = vpop.f32.mrb[32].mxu0 }
 0x66e   :  { %v2812_v26 = vpop.f32.mrb[33].mxu0  ;;  %v1825_v17 = vadd.f32 %v2438_v16, %v3529_v25 }
 0x66f   :  { %v1827_v27 = vpop.f32.mrb[34].mxu0 }
 0x670   :  { %v2813_v28 = vpop.f32.mrb[35].mxu0  ;;  %v1830_v18 = vsub.f32 0.0, %v1825_v17 }
 0x672   :  { %v1831_v19 = vmul.f32 1.442695, %v1830_v18 }
 0x6f0   :  { %v1619_v29 = vpop.xlane.xlu1 %1618 }
 0x6f1   :  { %v1621_v30 = vmul.f32 0.015625, %v1619_v29 }
 0x6f3   :  { %v1622_v31 = vsub.f32 %v1614_v22, %v1621_v30 }
 0x6f5   :  { %v1623_v32 = vmul.f32 %v1622_v31, %v1622_v31 }
 0x6f7   :  { %v1624_v0 = vsel %vm572_vm3, %v1623_v32, 0.0 }
 0x6f8   :  { %1625 = vadd.xlane.f32.xlu0 %v1624_v0 }
 0x785   :  { %v1626_v37 = vpop.xlane.xlu0 %1625 }
 0x786   :  { %v1627_v38 = vmul.f32 0.015625, %v1626_v37 }
 0x788   :  { %v1628_v40 = vadd.f32 1e-05, %v1627_v38 }
 0x78a   :  { %2994 = vrsqrt.f32 %v1628_v40 }
 0x794   :  { %v2995_v42 = vpop.eup %2994 }
 0x795   :  { %v1630_v44 = vmul.f32 %v2995_v42, %v1622_v31 }
 0x797   :  { %v1635_v46 = vmul.f32 %v2430_v43, %v1630_v44 }
 0x799   :  { %v1640_v47 = vadd.f32 %v2431_v45, %v1635_v46 }
 0x79b   :  { %v1642_v48 = vmul.f32 0.70710677, %v1640_v47  ;;  %v1641_v8 = vmul.f32 0.5, %v1640_v47 }
 0x79d   :  { %v1643_v50 = vand.u32 2147483647, %v1642_v48  ;;  %vm1663_vm9 = vcmp.ge.f32.partialorder %v1642_v48, 0.0  ;;  %v2969_v48 = vld [vmem:[%s3681_s3 + $0x2c0] sm:$0xff]  }
 0x79e   :  { %2827 = vmatpush3.bf16.msra.mxu0 %v2969_v48 }
 0x79f   :  { %v1644_v51 = vmul.f32 0.3275911, %v1643_v50  ;;  %v1657_v53 = vsub.f32 0.0, %v1643_v50  ;;  %2828 = vmatprep.subr.bf16.mxu0 %v3021_v23 }
 0x7a1   :  { %v1645_v52 = vadd.f32 1.0, %v1644_v51  ;;  %v1658_v55 = vmul.f32 %v1657_v53, %v1643_v50  ;;  %v2970_v50 = vld [vmem:[%s3681_s3 + $0x2c8] sm:$0xff]  }
 0x7a2   :  { %2829 = vmatpush3.bf16.msra.mxu0 %v2970_v50  ;;  %v2467_v50 = vld [vmem:[%s3685_s4 + $0x12] ss:$0 sm:$0xff] }
 0x7a3   :  { %2996 = vrcp.f32 %v1645_v52  ;;  %v1659_v58 = vmul.f32 1.442695, %v1658_v55  ;;  %2840 = vmatprep.subr.bf16.mxu0 %v3021_v23  ;;  %v2450_v55 = vld [vmem:[%s3685_s4 + $0xb] ss:$0 sm:$0xff] }
 0x7a5   :  { %2998 = vpow2.f32 %v1659_v58 }
 0x7a6   :  { %3000 = vpow2.f32 %v1831_v19 }
 0x7ad   :  { %v2997_v54 = vpop.eup %2996 }
 0x7ae   :  { %v1648_v56 = vmul.f32 1.0614054, %v2997_v54 }
 0x7af   :  { %v2999_v3 = vpop.eup %2998 }
 0x7b0   :  { %v1649_v57 = vadd.f32 -1.4531521, %v1648_v56  ;;  %v3001_v20 = vpop.eup %3000 }
 0x7b1   :  { %v1833_v21 = vadd.f32 1.0, %v3001_v20 }
 0x7b2   :  { %v1650_v59 = vmul.f32 %v2997_v54, %v1649_v57  ;;  %v2451_v57 = vld [vmem:[%s3685_s4 + $0xc] ss:$0 sm:$0xff] }
 0x7b3   :  { %3002 = vrcp.f32 %v1833_v21 }
 0x7b4   :  { %v1651_v60 = vadd.f32 1.4214138, %v1650_v59 }
 0x7b6   :  { %v1652_v61 = vmul.f32 %v2997_v54, %v1651_v60 }
 0x7b8   :  { %v1653_v62 = vadd.f32 -0.28449672, %v1652_v61  ;;  %v2971_v61 = vld [vmem:[%s3681_s3 + $0x2d8] sm:$0xff]  }
 0x7ba   :  { %v1654_v63 = vmul.f32 %v2997_v54, %v1653_v62 }
 0x7bc   :  { %v1655_v1 = vadd.f32 0.2548296, %v1654_v63  ;;  %v2972_v63 = vld [vmem:[%s3681_s3 + $0x2e0] sm:$0xff]  }
 0x7bd   :  { %v3003_v22 = vpop.eup %3002 }
 0x7be   :  { %v1656_v2 = vmul.f32 %v2997_v54, %v1655_v1  ;;  %v1837_v26 = vsub.f32 1.0, %v3003_v22  ;;  %v2973_v1 = vld [vmem:[%s3681_s3 + $0x2e8] sm:$0xff]  }
 0x7c0   :  { %v1661_v4 = vmul.f32 %v2999_v3, %v1656_v2  ;;  %v1838_v32 = vmul.f32 %v1837_v26, %v3305_v49  ;;  %v2109_v2 = vrot.slane %v3305_v49, 6  ;;  %v2974_v3 = vld [vmem:[%s3681_s3 + $0x2f0] sm:$0xff]  }
 0x7c2   :  { %v1662_v5 = vsub.f32 1.0, %v1661_v4 }
 0x7c4   :  { %v1664_v6 = vsub.f32 0.0, %v1662_v5 }
 0x7c6   :  { %v1665_v7 = vsel %vm1663_vm9, %v1662_v5, %v1664_v6  ;;  %v2452_v6 = vld [vmem:[%s3685_s4 + $0xd] ss:$0 sm:$0xff] }
 0x7c7   :  { %v1666_v9 = vadd.f32 1.0, %v1665_v7 }
 0x7c9   :  { %v1667_v10 = vmul.f32 %v1666_v9, %v1641_v8 }
 0x7cb   :  { %v1676_v12 = vpack.c.bf16 %v1667_v10, %v1667_v10 }
 0x7cd   :  { %2799 = vmatmul.mubr.msk.bf16.vlgmr.msra.gmra.mrb[32].mxu1 %vm583_vm0, %v1676_v12 }
 0x7ce   :  { %2815 = vmatpush3.bf16.msra.mxu1 %v2965_v11  ;;  %2822 = vmatprep.mubr.msk.bf16.mxu1 %vm3022_vm4, %v3021_v23 }
 0x7cf   :  { %2816 = vmatprep.subr.bf16.mxu1 %v3021_v23 }
 0x7d2   :  { %2817 = vmatpush3.bf16.msra.mxu1 %v2966_v13 }
 0x7d3   :  { %2818 = vmatprep.subr.bf16.mxu1 %v3021_v23 }
 0x7d6   :  { %2819 = vmatpush3.bf16.msra.mxu1 %v2967_v14 }
 0x7d7   :  { %2820 = vmatprep.subr.bf16.mxu1 %v3021_v23 }
 0x7da   :  { %2821 = vmatpush3.bf16.msra.mxu1 %v2968_v15 }
 0x7db   :  { %2834 = vmatprep.subr.bf16.mxu1 %v3021_v23 }
 0x8a0   :  { %v1743_v27 = vpop.f32.mrb[32].mxu1 }
 0x8a1   :  { %v1744_v28 = vadd.f32 %v2432_v24, %v1743_v27  ;;  %v2800_v29 = vpop.f32.mrb[33].mxu1 }
 0x8a2   :  { %v1746_v30 = vpop.f32.mrb[34].mxu1  ;;  %v2456_v29 = vld [vmem:[%s3685_s4 + $0xe] ss:$0 sm:$0xff] }
 0x8a3   :  { %v1836_v31 = vmul.f32 %v3003_v22, %v1744_v28  ;;  %v2801_v25 = vpop.f32.mrb[35].mxu1  ;;  %v2975_v22 = vld [vmem:[%s3681_s3 + $0x2d0] sm:$0xff]  }
 0x8a5   :  { %v3581_v0 = vadd.f32 %v1838_v32, %v1836_v31  ;;  %v2457_v31 = vld [vmem:[%s3685_s4 + $0xf] ss:$0 sm:$0xff] }
 0x8a7   :  { %v1848_v33 = vpack.c.bf16 %v3581_v0, %v3581_v0  ;;  %v2111_v4 = vsel %vm679_vm7, %v3581_v0, %v2109_v2 }
 0x8a8   :  { %v2120_v5 = vpack.c.bf16 %v2111_v4, %v2111_v4 }
 0x8a9   :  { %2823 = vmatmul.mubr.msk.bf16.vlgmr.msra.gmra.mrb[36].mxu1 %vm583_vm0, %v1848_v33 }
 0x8aa   :  { %2836 = vmatprep.mubr.msk.bf16.mxu1 %vm3022_vm4, %v3021_v23  ;;  %2835 = vmatpush3.bf16.msra.mxu1 %v2975_v22 }
 0x8ab   :  { %2852 = vmatprep.subr.bf16.mxu1 %v3021_v23 }
 0x97c   :  { %v1915_v35 = vpop.f32.mrb[36].mxu1 }
 0x97d   :  { %v1916_v36 = vadd.f32 %v2444_v34, %v1915_v35  ;;  %v2824_v37 = vpop.f32.mrb[37].mxu1  ;;  %v2976_v34 = vld [vmem:[%s3681_s3 + $0x2f8] sm:$0xff]  }
 0x97e   :  { %v1918_v38 = vpop.f32.mrb[38].mxu1  ;;  %v2461_v37 = vld [vmem:[%s3685_s4 + $0x11] ss:$0 sm:$0xff] }
 0x97f   :  { %v2825_v40 = vpop.f32.mrb[39].mxu1  ;;  %v1924_v42 = vsel %vm1923_vm10, %v1916_v36, 0.0  ;;  %v2978_v38 = vld [vmem:[%s3681_s3 + $0x308] sm:$0xff]  }
 0x980   :  { %1925 = vadd.xlane.f32.xlu1 %v1924_v42  ;;  %v2979_v42 = vld [vmem:[%s3681_s3 + $0x310] sm:$0xff]  }
 0xa0d   :  { %v1926_v43 = vpop.xlane.xlu1 %1925 }
 0xa0e   :  { %v1928_v44 = vmul.f32 0.03125, %v1926_v43 }
 0xa10   :  { %v1929_v45 = vsub.f32 %v1916_v36, %v1928_v44  ;;  %v2977_v36 = vld [vmem:[%s3681_s3 + $0x300] sm:$0xff]   ;;  %s3023_s3 = smov 125  }
 0xa12   :  { %v1930_v46 = vmul.f32 %v1929_v45, %v1929_v45 }
 0xa14   :  { %v1931_v47 = vsel %vm1923_vm10, %v1930_v46, 0.0 }
 0xa15   :  { %1932 = vadd.xlane.f32.xlu0 %v1931_v47 }
 0xaa2   :  { %v1933_v51 = vpop.xlane.xlu0 %1932 }
 0xaa3   :  { %v1934_v52 = vmul.f32 0.03125, %v1933_v51 }
 0xaa5   :  { %v1935_v53 = vadd.f32 1e-05, %v1934_v52 }
 0xaa7   :  { %3004 = vrsqrt.f32 %v1935_v53 }
 0xab1   :  { %v3005_v54 = vpop.eup %3004 }
 0xab2   :  { %v1937_v56 = vmul.f32 %v3005_v54, %v1929_v45 }
 0xab4   :  { %v1942_v58 = vmul.f32 %v2450_v55, %v1937_v56 }
 0xab6   :  { %v1947_v59 = vadd.f32 %v2451_v57, %v1942_v58 }
 0xab8   :  { %v1948_v60 = vmax.f32 %v1947_v59, 0.0 }
 0xaba   :  { %v1953_v62 = vpack.c.bf16 %v1948_v60, %v1948_v60 }
 0xabc   :  { %2831 = vmatmul.mubr.msk.bf16.vlgmr.msra.gmra.mrb[36].mxu0 %vm1971_vm11, %v1953_v62  ;;  %v3024_v62 = vmov 0  }
 0xabd   :  { %2841 = vmatpush3.bf16.msra.mxu0 %v2971_v61  ;;  %2848 = vmatprep.mubr.msk.bf16.mxu0 %vm3022_vm4, %v3021_v23 }
 0xabe   :  { %2842 = vmatprep.subr.bf16.mxu0 %v3021_v23  ;;  %2870 = vset.pattern.permute.xlu1 %v3024_v62 }
 0xabf   :  { %2871 = vset.pattern.permute.xlu0 %v3024_v62 }
 0xac1   :  { %2843 = vmatpush3.bf16.msra.mxu0 %v2972_v63  ;;  %v2460_v63 = vld [vmem:[%s3685_s4 + $0x10] ss:$0 sm:$0xff]  ;;  %s3025_s4 = smov 64  }
 0xac2   :  { %2844 = vmatprep.subr.bf16.mxu0 %v3021_v23 }
 0xac5   :  { %2845 = vmatpush3.bf16.msra.mxu0 %v2973_v1 }
 0xac6   :  { %2846 = vmatprep.subr.bf16.mxu0 %v3021_v23 }
 0xac9   :  { %2847 = vmatpush3.bf16.msra.mxu0 %v2974_v3 }
 0xacc   :  { %2849 = vmatmul.mubr.msk.bf16.vlgmr.msra.gmra.mrb[40].mxu0 %vm583_vm0, %v2120_v5 }
 0xb8f   :  { %v2009_v7 = vpop.f32.mrb[36].mxu0 }
 0xb90   :  { %v2010_v8 = vadd.f32 %v2452_v6, %v2009_v7  ;;  %v2832_v9 = vpop.f32.mrb[37].mxu0 }
 0xb91   :  { %v2012_v10 = vpop.f32.mrb[38].mxu0 }
 0xb92   :  { %v2833_v11 = vpop.f32.mrb[39].mxu0  ;;  %v2018_v12 = vsel %vm2017_vm12, %v2010_v8, 0.0 }
 0xb93   :  { %2019 = vadd.xlane.f32.xlu1 %v2018_v12 }
 0xb9f   :  { %v2187_v13 = vpop.f32.mrb[40].mxu0 }
 0xba0   :  { %v2850_v14 = vpop.f32.mrb[41].mxu0  ;;  %v2188_v40 = vadd.f32 %v2461_v37, %v2187_v13 }
 0xba1   :  { %v2190_v15 = vpop.f32.mrb[42].mxu0 }
 0xba2   :  { %v2851_v16 = vpop.f32.mrb[43].mxu0  ;;  %v2193_v43 = vmax.f32 %v2188_v40, 0.0 }
 0xba4   :  { %v2202_v44 = vpack.c.bf16 %v2193_v43, %v2193_v43 }
 0xc20   :  { %v2020_v17 = vpop.xlane.xlu1 %2019 }
 0xc21   :  { %v2022_v18 = vmul.f32 0.0625, %v2020_v17 }
 0xc23   :  { %v2023_v19 = vsub.f32 %v2010_v8, %v2022_v18 }
 0xc25   :  { %v2024_v20 = vmul.f32 %v2023_v19, %v2023_v19 }
 0xc27   :  { %v2025_v21 = vsel %vm2017_vm12, %v2024_v20, 0.0 }
 0xc28   :  { %2026 = vadd.xlane.f32.xlu0 %v2025_v21 }
 0xcb5   :  { %v2027_v24 = vpop.xlane.xlu0 %2026 }
 0xcb6   :  { %v2028_v26 = vmul.f32 0.0625, %v2027_v24 }
 0xcb8   :  { %v2029_v27 = vadd.f32 1e-05, %v2028_v26 }
 0xcba   :  { %3006 = vrsqrt.f32 %v2029_v27 }
 0xcc4   :  { %v3007_v28 = vpop.eup %3006 }
 0xcc5   :  { %v2031_v30 = vmul.f32 %v3007_v28, %v2023_v19 }
 0xcc7   :  { %v2036_v32 = vmul.f32 %v2456_v29, %v2031_v30 }
 0xcc9   :  { %v2041_v25 = vadd.f32 %v2457_v31, %v2036_v32 }
 0xccb   :  { %v2042_v33 = vmax.f32 %v2041_v25, 0.0 }
 0xccd   :  { %v2045_v35 = vpack.c.bf16 %v2042_v33, %v2042_v33 }
 0xccf   :  { %2837 = vmatmul.mubr.msk.bf16.vlgmr.msra.gmra.mrb[40].mxu1 %vm2052_vm13, %v2045_v35 }
 0xcd0   :  { %2853 = vmatpush3.bf16.msra.mxu1 %v2976_v34  ;;  %2860 = vmatprep.mubr.msk.bf16.mxu1 %vm3022_vm4, %v3021_v23 }
 0xcd1   :  { %2854 = vmatprep.subr.bf16.mxu1 %v3021_v23 }
 0xcd4   :  { %2855 = vmatpush3.bf16.msra.mxu1 %v2977_v36 }
 0xcd5   :  { %2856 = vmatprep.subr.bf16.mxu1 %v3021_v23 }
 0xcd8   :  { %2857 = vmatpush3.bf16.msra.mxu1 %v2978_v38 }
 0xcd9   :  { %2858 = vmatprep.subr.bf16.mxu1 %v3021_v23 }
 0xcdc   :  { %2859 = vmatpush3.bf16.msra.mxu1 %v2979_v42 }
 0xcdf   :  { %2861 = vmatmul.mubr.msk.bf16.vlgmr.msra.gmra.mrb[44].mxu1 %vm583_vm0, %v2202_v44 }
 0xda2   :  { %v2090_v45 = vpop.f32.mrb[40].mxu1 }
 0xda3   :  { %v2838_v46 = vpop.f32.mrb[41].mxu1  ;;  %v2101_v1 = vadd.f32 %v2460_v63, %v2090_v45 }
 0xda4   :  { %v2093_v47 = vpop.f32.mrb[42].mxu1 }
 0xda5   :  { %v2839_v48 = vpop.f32.mrb[43].mxu1  ;;  %v2102_v2 = vsub.f32 0.0, %v2101_v1 }
 0xda7   :  { %v2103_v3 = vmul.f32 1.442695, %v2102_v2 }
 0xdb2   :  { %v2269_v51 = vpop.f32.mrb[44].mxu1 }
 0xdb3   :  { %v2270_v52 = vadd.f32 %v2467_v50, %v2269_v51  ;;  %v2862_v53 = vpop.f32.mrb[45].mxu1 }
 0xdb4   :  { %v2272_v54 = vpop.f32.mrb[46].mxu1 }
 0xdb5   :  { %v2275_v55 = vsub.f32 0.0, %v2270_v52  ;;  %v2863_v56 = vpop.f32.mrb[47].mxu1 }
 0xdb7   :  { %v2276_v57 = vmul.f32 1.442695, %v2275_v55 }
 0xdb9   :  { %3008 = vpow2.f32 %v2276_v57 }
 0xdc3   :  { %v3009_v23 = vpop.eup %3008 }
 0xdc4   :  { %v2278_v58 = vadd.f32 1.0, %v3009_v23 }
 0xdc6   :  { %3010 = vrcp.f32 %v2278_v58 }
 0xdc7   :  { %3012 = vpow2.f32 %v2103_v3 }
 0xdd0   :  { %v3011_v59 = vpop.eup %3010 }
 0xdd1   :  { %v2282_v60 = vsel %vm2281_vm14, %v3011_v59, 0.0  ;;  %v2290_v61 = vrot.slane %v3011_v59, 2  ;;  %v3013_v4 = vpop.eup %3012 }
 0xdd2   :  { %2283 = vadd.xlane.f32.xlu1 %v2282_v60  ;;  %v2105_v5 = vadd.f32 1.0, %v3013_v4 }
 0xdd3   :  { %2291 = vrot.lane.b32.xlu0 %v2290_v61, %s3023_s3 }
 0xdd4   :  { %3014 = vrcp.f32 %v2105_v5 }
 0xdde   :  { %v3015_v6 = vpop.eup %3014 }
 0xddf   :  { %v2286_v9 = vmul.f32 0.7, %v3015_v6 }
 0xe45   :  { %v2292_v12 = vpop.permute.xlu0 %2291 }
 0xe5f   :  { %v2284_v7 = vpop.xlane.xlu1 %2283 }
 0xe60   :  { %v2285_v8 = vmul.f32 0.33333334, %v2284_v7 }
 0xe62   :  { %v2287_v10 = vmul.f32 0.3, %v2285_v8 }
 0xe64   :  { %v2288_v11 = vadd.f32 %v2287_v10, %v2286_v9 }
 0xe66   :  { %v2294_v13 = vadd.f32 %v2292_v12, %v2288_v11 }
 0xe68   :  { %v2295_v14 = vsub.f32 0.0, %v2294_v13 }
 0xe6a   :  { %v2296_v15 = vmul.f32 1.442695, %v2295_v14 }
 0xe6c   :  { %3016 = vpow2.f32 %v2296_v15 }
 0xe76   :  { %v3017_v16 = vpop.eup %3016 }
 0xe77   :  { %v2298_v17 = vadd.f32 1.0, %v3017_v16 }
 0xe79   :  { %3018 = vrcp.f32 %v2298_v17 }
 0xe83   :  { %v3019_v18 = vpop.eup %3018 }
 0xe84   :  { %2318 = vperm.xlu1 %2870, %v3019_v18  }
 0xe88   :  { %2306 = vrot.lane.b32.xlu1 %v3302_v41, %s3025_s4 }
 0xe8c   :  { %2311 = vrot.lane.b32.xlu1 %v3305_v49, %s3025_s4 }
 0xf03   :  { %v2319_v19 = vpop.permute.xlu1 %2318 }
 0xf04   :  { %2321 = vst [vmem:[%s3686_s5 + $0x4] sm:$0x3] %v2319_v19 }
 0xf07   :  { %v2307_v20 = vpop.permute.xlu1 %2306 }
 0xf08   :  { %v2309_v21 = vsel %vm583_vm0, %v3293_v39, %v2307_v20 }
 0xf09   :  { %2310 = vst [vmem:[%s3686_s5] sm:$0x3] %v2309_v21 }
 0xf0b   :  { %v2312_v22 = vpop.permute.xlu1 %2311 }
 0xf0c   :  { %v2314_v24 = vsel %vm583_vm0, %v3581_v0, %v2312_v22 }
 0xf0d   :  { %2315 = vst [vmem:[%s3686_s5 + $0x2] sm:$0x3] %v2314_v24 }

</bundles_post_ra>
